<compile_context>
chip_gen: v7x
topology: tpu7x:2x2x1
jax: 0.10.0
libtpu: 0.0.40
codegen_flags: <defaults>
</compile_context>

<pallas_src>
import functools

import jax
import jax.numpy as jnp
from jax.experimental import pallas as pl
from jax.experimental.pallas import tpu as pltpu


def _regressor_fused_kernel(x_ref, wh_ref, bh_ref, wo_ref, bo_ref, o_ref,
                            pad_ref, *, H, W, C, n_hidden):
    """Fused Regressor head for one batch element.

    x_ref:   (1, H, W*C)                          lane-dense input activation
    wh_ref:  (max(n_hidden,1), 3, (W+2)*C, W*C)   hidden block-Toeplitz weights
    bh_ref:  (max(n_hidden,1), W*C)               hidden biases (tiled over W)
    wo_ref:  (3, (W+2)*C, W*Cout)                 final block-Toeplitz weights
    bo_ref:  (1, W*Cout)                          final bias (tiled over W)
    o_ref:   (1, H, W*Cout)                       lane-dense output
    pad_ref: (H+2, (W+2)*C) f32 VMEM scratch      zero-padded activation rows
    """
    # Border must be zero; the interior is overwritten below.  Zeroed every
    # grid step (it is ~10 KiB) so v7x megacore batch-sharding stays correct.
    pad_ref[...] = jnp.zeros_like(pad_ref)

    def conv3x3(w3, b_row, relu):
        # w3: (3, (W+2)*C, n_out); 3 matmuls, one per vertical tap.
        n_out = w3.shape[-1]
        acc = jnp.zeros((H, n_out), jnp.float32)
        for ky in range(3):
            acc = acc + jnp.dot(pad_ref[ky:ky + H, :], w3[ky],
                                preferred_element_type=jnp.float32)
        acc = acc + b_row[None, :]
        if relu:
            acc = jnp.maximum(acc, 0.0)
        return acc  # (H, n_out) lane-dense

    # Place the input activation in the interior of the padded row buffer.
    pad_ref[1:H + 1, C:C + W * C] = x_ref[0]

    for li in range(n_hidden):
        act = conv3x3(wh_ref[li], bh_ref[li], relu=True)     # (H, W*C)
        pad_ref[1:H + 1, C:C + W * C] = act

    o_ref[0] = conv3x3(wo_ref[...], bo_ref[0], relu=False)   # (H, W*Cout)


def _pack_toeplitz(w9, W):
    """Pack (9, Cin, Cout) tap-major conv weights into per-ky block-Toeplitz
    row matrices of shape (3, (W+2)*Cin, W*Cout).

    M[ky, q*Cin+ci, x*Cout+co] = w[ky, q-x, ci, co] if 0 <= q-x <= 2 else 0,
    so a padded activation row-window (H, (W+2)*Cin) @ M[ky] accumulates the
    full horizontal+channel contraction of the conv for vertical tap ky.
    """
    _, Cin, Cout = w9.shape
    wr = w9.reshape(3, 3, Cin, Cout)                       # (ky, kx, ci, co)
    q = jnp.arange(W + 2)[:, None, None]
    x = jnp.arange(W)[None, :, None]
    kx = jnp.arange(3)[None, None, :]
    sel = (q == x + kx).astype(w9.dtype)                   # (W+2, W, 3)
    m = jnp.einsum('qxk,ykio->yqixo', sel, wr,
                   precision=jax.lax.Precision.HIGHEST)    # (3, W+2, Cin, W, Cout)
    return m.reshape(3, (W + 2) * Cin, W * Cout)


def init_regressor_params(key, in_channels, n_anchors, hidden_layers):
    """Deterministic synthetic parameters (matching nn.Conv2d shapes)."""
    params = []
    for _ in range(hidden_layers):
        key, kw, kb = jax.random.split(key, 3)
        w = 0.1 * jax.random.normal(kw, (9, in_channels, in_channels),
                                    jnp.float32)
        b = 0.1 * jax.random.normal(kb, (1, in_channels), jnp.float32)
        params.append((w, b))
    key, kw, kb = jax.random.split(key, 3)
    w = 0.1 * jax.random.normal(kw, (9, in_channels, n_anchors * 4),
                                jnp.float32)
    b = 0.1 * jax.random.normal(kb, (1, n_anchors * 4), jnp.float32)
    params.append((w, b))
    return params


def regressor_forward(x_nchw, params, n_anchors):
    """Forward pass equivalent to the PyTorch `Regressor.forward`.

    x_nchw: (B, C, H, W) like PyTorch. Returns (B, H*W*n_anchors, 4).
    """
    B, C, H, W = x_nchw.shape
    n_hidden = len(params) - 1
    Cout = params[-1][0].shape[-1]
    assert Cout == n_anchors * 4, (Cout, n_anchors)

    # NCHW -> NHWC -> lane-dense (B, H, W*C) row slabs.
    x = jnp.transpose(x_nchw, (0, 2, 3, 1)).reshape(B, H, W * C)

    # Trace-time weight packing (tiny at these sizes).
    if n_hidden > 0:
        wh = jnp.stack([_pack_toeplitz(w, W) for w, _ in params[:-1]])
        bh = jnp.stack([jnp.tile(b[0], W) for _, b in params[:-1]])
    else:  # dummies; never read by the kernel when n_hidden == 0
        wh = jnp.zeros((1, 3, (W + 2) * C, W * C), jnp.float32)
        bh = jnp.zeros((1, W * C), jnp.float32)
    wo = _pack_toeplitz(params[-1][0], W)                   # (3, (W+2)C, W*Cout)
    bo = jnp.tile(params[-1][1][0], W)[None, :]             # (1, W*Cout)

    kernel = functools.partial(_regressor_fused_kernel,
                               H=H, W=W, C=C, n_hidden=n_hidden)
    out = pl.pallas_call(
        kernel,
        out_shape=jax.ShapeDtypeStruct((B, H, W * Cout), jnp.float32),
        grid=(B,),
        in_specs=[
            pl.BlockSpec((1, H, W * C), lambda i: (i, 0, 0)),
            pl.BlockSpec(wh.shape, lambda i: (0, 0, 0, 0)),
            pl.BlockSpec(bh.shape, lambda i: (0, 0)),
            pl.BlockSpec(wo.shape, lambda i: (0, 0, 0)),
            pl.BlockSpec(bo.shape, lambda i: (0, 0)),
        ],
        out_specs=pl.BlockSpec((1, H, W * Cout), lambda i: (i, 0, 0)),
        scratch_shapes=[pltpu.VMEM((H + 2, (W + 2) * C), jnp.float32)],
        compiler_params=pltpu.CompilerParams(
            dimension_semantics=("parallel",)),
    )(x, wh, bh, wo, bo)

    # PyTorch: permute(0,2,3,1).contiguous().view(B, -1, 4).  Our output is
    # already in (b, y, x*Cout) order, so a plain reshape matches.
    return out.reshape(B, H * W * n_anchors, 4)


def regressor_reference(x_nchw, params, n_anchors):
    """Pure-JAX reference (lax conv) for correctness checking."""
    x = jnp.transpose(x_nchw, (0, 2, 3, 1))
    n_layers = len(params)
    for li, (w, b) in enumerate(params):
        w_hwio = w.reshape(3, 3, w.shape[1], w.shape[2])
        x = jax.lax.conv_general_dilated(
            x, w_hwio, window_strides=(1, 1), padding="SAME",
            dimension_numbers=("NHWC", "HWIO", "NHWC"))
        x = x + b[0]
        if li < n_layers - 1:
            x = jnp.maximum(x, 0.0)
    B, H, W, _ = x.shape
    return x.reshape(B, H * W * n_anchors, 4)


if __name__ == "__main__":
    # Small shapes consistent with the module.
    batch = 2
    in_channels = 8
    n_anchors = 3
    hidden_layers = 2
    H = W = 16

    key = jax.random.PRNGKey(0)
    key, kx = jax.random.split(key)
    x = jax.random.normal(kx, (batch, in_channels, H, W), jnp.float32)

    params = init_regressor_params(key, in_channels, n_anchors, hidden_layers)

    out = regressor_forward(x, params, n_anchors)
    out = jax.block_until_ready(out)

    assert out.shape == (batch, H * W * n_anchors, 4), out.shape

    ref = jax.block_until_ready(regressor_reference(x, params, n_anchors))
    assert jnp.allclose(out, ref, rtol=1e-4, atol=1e-4), "mismatch vs reference"

    print("KERNEL_OK")
</pallas_src>

<mosaic_0001>
module attributes {stable_mosaic.version = 11 : i64} {
  func.func @_regressor_fused_kernel(%arg0: i32, %arg1: memref<1x16x128xf32, #tpu.memory_space<vmem>>, %arg2: memref<2x3x144x128xf32, #tpu.memory_space<vmem>>, %arg3: memref<2x128xf32, #tpu.memory_space<vmem>>, %arg4: memref<3x144x192xf32, #tpu.memory_space<vmem>>, %arg5: memref<1x192xf32, #tpu.memory_space<vmem>>, %arg6: memref<1x16x192xf32, #tpu.memory_space<vmem>>, %arg7: memref<18x144xf32, #tpu.memory_space<vmem>>) attributes {dimension_semantics = [#tpu.dimension_semantics<parallel>], iteration_bounds = array<i64: 2>, scalar_prefetch = 0 : i64, scratch_operands = 1 : i64, tpu.core_type = #tpu.core_type<tc>, window_params = [{transform_indices = @transform_0, window_bounds = array<i64: 1, 16, 128>}, {pipeline_mode = #tpu.pipeline_mode<synchronous>, transform_indices = @transform_1, window_bounds = array<i64: 2, 3, 144, 128>}, {pipeline_mode = #tpu.pipeline_mode<synchronous>, transform_indices = @transform_2, window_bounds = array<i64: 2, 128>}, {pipeline_mode = #tpu.pipeline_mode<synchronous>, transform_indices = @transform_3, window_bounds = array<i64: 3, 144, 192>}, {pipeline_mode = #tpu.pipeline_mode<synchronous>, transform_indices = @transform_4, window_bounds = array<i64: 1, 192>}, {transform_indices = @transform_5, window_bounds = array<i64: 1, 16, 192>}]} {
    %cst = arith.constant 0.000000e+00 : f32
    %0 = vector.broadcast %cst : f32 to vector<18x144xf32>
    %c0 = arith.constant 0 : index
    %c0_0 = arith.constant 0 : index
    %1 = vector.load %arg7[%c0, %c0_0] : memref<18x144xf32, #tpu.memory_space<vmem>>, vector<18x144xf32>
    tpu.vector_store %arg7[%c0, %c0_0], %0 {strides = array<i32>} : memref<18x144xf32, #tpu.memory_space<vmem>>, vector<18x144xf32>,
    %c0_1 = arith.constant 0 : index
    %c0_2 = arith.constant 0 : index
    %c0_3 = arith.constant 0 : index
    %2 = vector.load %arg1[%c0_1, %c0_2, %c0_3] : memref<1x16x128xf32, #tpu.memory_space<vmem>>, vector<1x16x128xf32>
    %3 = vector.shape_cast %2 : vector<1x16x128xf32> to vector<16x128xf32>
    %c1 = arith.constant 1 : index
    %c8 = arith.constant 8 : index
    %4 = vector.load %arg7[%c1, %c8] : memref<18x144xf32, #tpu.memory_space<vmem>>, vector<16x128xf32>
    tpu.vector_store %arg7[%c1, %c8], %3 {strides = array<i32>} : memref<18x144xf32, #tpu.memory_space<vmem>>, vector<16x128xf32>,
    %c0_4 = arith.constant 0 : index
    %c0_5 = arith.constant 0 : index
    %c0_6 = arith.constant 0 : index
    %c0_7 = arith.constant 0 : index
    %5 = vector.load %arg2[%c0_4, %c0_5, %c0_6, %c0_7] : memref<2x3x144x128xf32, #tpu.memory_space<vmem>>, vector<1x3x144x128xf32>
    %6 = vector.shape_cast %5 : vector<1x3x144x128xf32> to vector<3x144x128xf32>
    %c0_8 = arith.constant 0 : index
    %c0_9 = arith.constant 0 : index
    %7 = vector.load %arg3[%c0_8, %c0_9] : memref<2x128xf32, #tpu.memory_space<vmem>>, vector<1x128xf32>
    %8 = vector.shape_cast %7 : vector<1x128xf32> to vector<128xf32>
    %cst_10 = arith.constant 0.000000e+00 : f32
    %9 = vector.broadcast %cst_10 : f32 to vector<16x128xf32>
    %c0_11 = arith.constant 0 : index
    %c0_12 = arith.constant 0 : index
    %10 = vector.load %arg7[%c0_11, %c0_12] : memref<18x144xf32, #tpu.memory_space<vmem>>, vector<16x144xf32>
    %11 = vector.extract_strided_slice %6 {offsets = [0, 0, 0], sizes = [1, 144, 128], strides = [1, 1, 1]} : vector<3x144x128xf32> to vector<1x144x128xf32>
    %12 = vector.shape_cast %11 : vector<1x144x128xf32> to vector<144x128xf32>
    %cst_13 = arith.constant dense<0.000000e+00> : vector<16x128xf32>
    %13 = tpu.matmul %10, %12, %cst_13 {dimension_numbers = #tpu.dot_dimension_numbers<[1], [0], [0], [1], [0, 0, 1, 1], [], []>} : vector<16x144xf32>, vector<144x128xf32>, vector<16x128xf32> -> vector<16x128xf32>
    %14 = arith.addf %9, %13 : vector<16x128xf32>
    %c1_14 = arith.constant 1 : index
    %c0_15 = arith.constant 0 : index
    %15 = vector.load %arg7[%c1_14, %c0_15] : memref<18x144xf32, #tpu.memory_space<vmem>>, vector<16x144xf32>
    %16 = vector.extract_strided_slice %6 {offsets = [1, 0, 0], sizes = [1, 144, 128], strides = [1, 1, 1]} : vector<3x144x128xf32> to vector<1x144x128xf32>
    %17 = vector.shape_cast %16 : vector<1x144x128xf32> to vector<144x128xf32>
    %cst_16 = arith.constant dense<0.000000e+00> : vector<16x128xf32>
    %18 = tpu.matmul %15, %17, %cst_16 {dimension_numbers = #tpu.dot_dimension_numbers<[1], [0], [0], [1], [0, 0, 1, 1], [], []>} : vector<16x144xf32>, vector<144x128xf32>, vector<16x128xf32> -> vector<16x128xf32>
    %19 = arith.addf %14, %18 : vector<16x128xf32>
    %c2 = arith.constant 2 : index
    %c0_17 = arith.constant 0 : index
    %20 = vector.load %arg7[%c2, %c0_17] : memref<18x144xf32, #tpu.memory_space<vmem>>, vector<16x144xf32>
    %21 = vector.extract_strided_slice %6 {offsets = [2, 0, 0], sizes = [1, 144, 128], strides = [1, 1, 1]} : vector<3x144x128xf32> to vector<1x144x128xf32>
    %22 = vector.shape_cast %21 : vector<1x144x128xf32> to vector<144x128xf32>
    %cst_18 = arith.constant dense<0.000000e+00> : vector<16x128xf32>
    %23 = tpu.matmul %20, %22, %cst_18 {dimension_numbers = #tpu.dot_dimension_numbers<[1], [0], [0], [1], [0, 0, 1, 1], [], []>} : vector<16x144xf32>, vector<144x128xf32>, vector<16x128xf32> -> vector<16x128xf32>
    %24 = arith.addf %19, %23 : vector<16x128xf32>
    %25 = vector.shape_cast %8 : vector<128xf32> to vector<1x128xf32>
    %26 = vector.broadcast %25 : vector<1x128xf32> to vector<16x128xf32>
    %27 = arith.addf %24, %26 : vector<16x128xf32>
    %cst_19 = arith.constant 0.000000e+00 : f32
    %28 = vector.broadcast %cst_19 : f32 to vector<16x128xf32>
    %29 = arith.maximumf %27, %28 : vector<16x128xf32>
    %c1_20 = arith.constant 1 : index
    %c8_21 = arith.constant 8 : index
    %30 = vector.load %arg7[%c1_20, %c8_21] : memref<18x144xf32, #tpu.memory_space<vmem>>, vector<16x128xf32>
    tpu.vector_store %arg7[%c1_20, %c8_21], %29 {strides = array<i32>} : memref<18x144xf32, #tpu.memory_space<vmem>>, vector<16x128xf32>,
    %c1_22 = arith.constant 1 : index
    %c0_23 = arith.constant 0 : index
    %c0_24 = arith.constant 0 : index
    %c0_25 = arith.constant 0 : index
    %31 = vector.load %arg2[%c1_22, %c0_23, %c0_24, %c0_25] : memref<2x3x144x128xf32, #tpu.memory_space<vmem>>, vector<1x3x144x128xf32>
    %32 = vector.shape_cast %31 : vector<1x3x144x128xf32> to vector<3x144x128xf32>
    %c1_26 = arith.constant 1 : index
    %c0_27 = arith.constant 0 : index
    %33 = vector.load %arg3[%c1_26, %c0_27] : memref<2x128xf32, #tpu.memory_space<vmem>>, vector<1x128xf32>
    %34 = vector.shape_cast %33 : vector<1x128xf32> to vector<128xf32>
    %cst_28 = arith.constant 0.000000e+00 : f32
    %35 = vector.broadcast %cst_28 : f32 to vector<16x128xf32>
    %c0_29 = arith.constant 0 : index
    %c0_30 = arith.constant 0 : index
    %36 = vector.load %arg7[%c0_29, %c0_30] : memref<18x144xf32, #tpu.memory_space<vmem>>, vector<16x144xf32>
    %37 = vector.extract_strided_slice %32 {offsets = [0, 0, 0], sizes = [1, 144, 128], strides = [1, 1, 1]} : vector<3x144x128xf32> to vector<1x144x128xf32>
    %38 = vector.shape_cast %37 : vector<1x144x128xf32> to vector<144x128xf32>
    %cst_31 = arith.constant dense<0.000000e+00> : vector<16x128xf32>
    %39 = tpu.matmul %36, %38, %cst_31 {dimension_numbers = #tpu.dot_dimension_numbers<[1], [0], [0], [1], [0, 0, 1, 1], [], []>} : vector<16x144xf32>, vector<144x128xf32>, vector<16x128xf32> -> vector<16x128xf32>
    %40 = arith.addf %35, %39 : vector<16x128xf32>
    %c1_32 = arith.constant 1 : index
    %c0_33 = arith.constant 0 : index
    %41 = vector.load %arg7[%c1_32, %c0_33] : memref<18x144xf32, #tpu.memory_space<vmem>>, vector<16x144xf32>
    %42 = vector.extract_strided_slice %32 {offsets = [1, 0, 0], sizes = [1, 144, 128], strides = [1, 1, 1]} : vector<3x144x128xf32> to vector<1x144x128xf32>
    %43 = vector.shape_cast %42 : vector<1x144x128xf32> to vector<144x128xf32>
    %cst_34 = arith.constant dense<0.000000e+00> : vector<16x128xf32>
    %44 = tpu.matmul %41, %43, %cst_34 {dimension_numbers = #tpu.dot_dimension_numbers<[1], [0], [0], [1], [0, 0, 1, 1], [], []>} : vector<16x144xf32>, vector<144x128xf32>, vector<16x128xf32> -> vector<16x128xf32>
    %45 = arith.addf %40, %44 : vector<16x128xf32>
    %c2_35 = arith.constant 2 : index
    %c0_36 = arith.constant 0 : index
    %46 = vector.load %arg7[%c2_35, %c0_36] : memref<18x144xf32, #tpu.memory_space<vmem>>, vector<16x144xf32>
    %47 = vector.extract_strided_slice %32 {offsets = [2, 0, 0], sizes = [1, 144, 128], strides = [1, 1, 1]} : vector<3x144x128xf32> to vector<1x144x128xf32>
    %48 = vector.shape_cast %47 : vector<1x144x128xf32> to vector<144x128xf32>
    %cst_37 = arith.constant dense<0.000000e+00> : vector<16x128xf32>
    %49 = tpu.matmul %46, %48, %cst_37 {dimension_numbers = #tpu.dot_dimension_numbers<[1], [0], [0], [1], [0, 0, 1, 1], [], []>} : vector<16x144xf32>, vector<144x128xf32>, vector<16x128xf32> -> vector<16x128xf32>
    %50 = arith.addf %45, %49 : vector<16x128xf32>
    %51 = vector.shape_cast %34 : vector<128xf32> to vector<1x128xf32>
    %52 = vector.broadcast %51 : vector<1x128xf32> to vector<16x128xf32>
    %53 = arith.addf %50, %52 : vector<16x128xf32>
    %cst_38 = arith.constant 0.000000e+00 : f32
    %54 = vector.broadcast %cst_38 : f32 to vector<16x128xf32>
    %55 = arith.maximumf %53, %54 : vector<16x128xf32>
    %c1_39 = arith.constant 1 : index
    %c8_40 = arith.constant 8 : index
    %56 = vector.load %arg7[%c1_39, %c8_40] : memref<18x144xf32, #tpu.memory_space<vmem>>, vector<16x128xf32>
    tpu.vector_store %arg7[%c1_39, %c8_40], %55 {strides = array<i32>} : memref<18x144xf32, #tpu.memory_space<vmem>>, vector<16x128xf32>,
    %c0_41 = arith.constant 0 : index
    %c0_42 = arith.constant 0 : index
    %c0_43 = arith.constant 0 : index
    %57 = vector.load %arg4[%c0_41, %c0_42, %c0_43] : memref<3x144x192xf32, #tpu.memory_space<vmem>>, vector<3x144x192xf32>
    %c0_44 = arith.constant 0 : index
    %c0_45 = arith.constant 0 : index
    %58 = vector.load %arg5[%c0_44, %c0_45] : memref<1x192xf32, #tpu.memory_space<vmem>>, vector<1x192xf32>
    %59 = vector.shape_cast %58 : vector<1x192xf32> to vector<192xf32>
    %cst_46 = arith.constant 0.000000e+00 : f32
    %60 = vector.broadcast %cst_46 : f32 to vector<16x192xf32>
    %c0_47 = arith.constant 0 : index
    %c0_48 = arith.constant 0 : index
    %61 = vector.load %arg7[%c0_47, %c0_48] : memref<18x144xf32, #tpu.memory_space<vmem>>, vector<16x144xf32>
    %62 = vector.extract_strided_slice %57 {offsets = [0, 0, 0], sizes = [1, 144, 192], strides = [1, 1, 1]} : vector<3x144x192xf32> to vector<1x144x192xf32>
    %63 = vector.shape_cast %62 : vector<1x144x192xf32> to vector<144x192xf32>
    %cst_49 = arith.constant dense<0.000000e+00> : vector<16x192xf32>
    %64 = tpu.matmul %61, %63, %cst_49 {dimension_numbers = #tpu.dot_dimension_numbers<[1], [0], [0], [1], [0, 0, 1, 1], [], []>} : vector<16x144xf32>, vector<144x192xf32>, vector<16x192xf32> -> vector<16x192xf32>
    %65 = arith.addf %60, %64 : vector<16x192xf32>
    %c1_50 = arith.constant 1 : index
    %c0_51 = arith.constant 0 : index
    %66 = vector.load %arg7[%c1_50, %c0_51] : memref<18x144xf32, #tpu.memory_space<vmem>>, vector<16x144xf32>
    %67 = vector.extract_strided_slice %57 {offsets = [1, 0, 0], sizes = [1, 144, 192], strides = [1, 1, 1]} : vector<3x144x192xf32> to vector<1x144x192xf32>
    %68 = vector.shape_cast %67 : vector<1x144x192xf32> to vector<144x192xf32>
    %cst_52 = arith.constant dense<0.000000e+00> : vector<16x192xf32>
    %69 = tpu.matmul %66, %68, %cst_52 {dimension_numbers = #tpu.dot_dimension_numbers<[1], [0], [0], [1], [0, 0, 1, 1], [], []>} : vector<16x144xf32>, vector<144x192xf32>, vector<16x192xf32> -> vector<16x192xf32>
    %70 = arith.addf %65, %69 : vector<16x192xf32>
    %c2_53 = arith.constant 2 : index
    %c0_54 = arith.constant 0 : index
    %71 = vector.load %arg7[%c2_53, %c0_54] : memref<18x144xf32, #tpu.memory_space<vmem>>, vector<16x144xf32>
    %72 = vector.extract_strided_slice %57 {offsets = [2, 0, 0], sizes = [1, 144, 192], strides = [1, 1, 1]} : vector<3x144x192xf32> to vector<1x144x192xf32>
    %73 = vector.shape_cast %72 : vector<1x144x192xf32> to vector<144x192xf32>
    %cst_55 = arith.constant dense<0.000000e+00> : vector<16x192xf32>
    %74 = tpu.matmul %71, %73, %cst_55 {dimension_numbers = #tpu.dot_dimension_numbers<[1], [0], [0], [1], [0, 0, 1, 1], [], []>} : vector<16x144xf32>, vector<144x192xf32>, vector<16x192xf32> -> vector<16x192xf32>
    %75 = arith.addf %70, %74 : vector<16x192xf32>
    %76 = vector.shape_cast %59 : vector<192xf32> to vector<1x192xf32>
    %77 = vector.broadcast %76 : vector<1x192xf32> to vector<16x192xf32>
    %78 = arith.addf %75, %77 : vector<16x192xf32>
    %c0_56 = arith.constant 0 : index
    %c0_57 = arith.constant 0 : index
    %c0_58 = arith.constant 0 : index
    %79 = vector.load %arg6[%c0_56, %c0_57, %c0_58] : memref<1x16x192xf32, #tpu.memory_space<vmem>>, vector<1x16x192xf32>
    %80 = vector.shape_cast %79 : vector<1x16x192xf32> to vector<16x192xf32>
    %81 = vector.shape_cast %78 : vector<16x192xf32> to vector<1x16x192xf32>
    tpu.vector_store %arg6[%c0_56, %c0_57, %c0_58], %81 {strides = array<i32>} : memref<1x16x192xf32, #tpu.memory_space<vmem>>, vector<1x16x192xf32>,
    return
  }
  func.func @transform_0(%arg0: i32) -> (i32, i32, i32) {
    %c0_i32 = arith.constant 0 : i32
    %c0_i32_0 = arith.constant 0 : i32
    %c0_i32_1 = arith.constant 0 : i32
    return %arg0, %c0_i32, %c0_i32_0 : i32, i32, i32
  }
  func.func @transform_1(%arg0: i32) -> (i32, i32, i32, i32) {
    %c0_i32 = arith.constant 0 : i32
    %c0_i32_0 = arith.constant 0 : i32
    %c0_i32_1 = arith.constant 0 : i32
    %c0_i32_2 = arith.constant 0 : i32
    %c0_i32_3 = arith.constant 0 : i32
    return %c0_i32, %c0_i32_0, %c0_i32_1, %c0_i32_2 : i32, i32, i32, i32
  }
  func.func @transform_2(%arg0: i32) -> (i32, i32) {
    %c0_i32 = arith.constant 0 : i32
    %c0_i32_0 = arith.constant 0 : i32
    %c0_i32_1 = arith.constant 0 : i32
    return %c0_i32, %c0_i32_0 : i32, i32
  }
  func.func @transform_3(%arg0: i32) -> (i32, i32, i32) {
    %c0_i32 = arith.constant 0 : i32
    %c0_i32_0 = arith.constant 0 : i32
    %c0_i32_1 = arith.constant 0 : i32
    %c0_i32_2 = arith.constant 0 : i32
    return %c0_i32, %c0_i32_0, %c0_i32_1 : i32, i32, i32
  }
  func.func @transform_4(%arg0: i32) -> (i32, i32) {
    %c0_i32 = arith.constant 0 : i32
    %c0_i32_0 = arith.constant 0 : i32
    %c0_i32_1 = arith.constant 0 : i32
    return %c0_i32, %c0_i32_0 : i32, i32
  }
  func.func @transform_5(%arg0: i32) -> (i32, i32, i32) {
    %c0_i32 = arith.constant 0 : i32
    %c0_i32_0 = arith.constant 0 : i32
    %c0_i32_1 = arith.constant 0 : i32
    return %arg0, %c0_i32, %c0_i32_0 : i32, i32, i32
  }
}

</mosaic_0001>

<bundles_post_ra>
// kernel: tpu_custom_call.1
= control target key start
LH: loop header
LB: loop body
LE: loop exit
PB: predicated region body
PF: predicated region fallthrough
CT: control target
= control target key end

     0   :  { %10 = vsyncpa [#allocation4], 0  ;;  %s2680_s0 = inlined_call_operand.hbm [shape: f32[2,16,128], index: 0, kind: input, shape index: {}]   ;;  %s2681_s1 = inlined_call_operand.hbm [shape: f32[2,3,144,128], index: 1, kind: input, shape index: {}]   ;;  %s2682_s2 = inlined_call_operand.vmem [shape: f32[2,128], index: 2, kind: input, shape index: {}]   ;;  %s2683_s3 = inlined_call_operand.hbm [shape: f32[3,144,192], index: 3, kind: input, shape index: {}]   ;;  %s2684_s4 = inlined_call_operand.vmem [shape: f32[1,192], index: 4, kind: input, shape index: {}]   ;;  %s2685_s5 = inlined_call_operand.hbm [shape: f32[2,16,192], index: 5, kind: output, shape index: {}]  }
   0x1   :  { %12 = vsyncpa [#allocation4 + $0x1], 0 }
   0x2   :  { %13 = vsyncpa [#allocation7], 0 }
   0x3   :  { %14 = vsyncpa [#allocation5], 0 }
   0x4   :  { %16 = vsyncpa [#allocation5 + $0x1], 0  ;;  %s2192_s18 = smov 0   ;;  %s2194_s19 = smov 0  }
   0x5   :  { %s2196_s20 = smov 0   ;;  %s2198_s21 = smov 0  }
   0x6 LB: > { %s2213_s22 = sadd.s32 4294967295, %s2147_s21   ;;  %s1579_s23 = sadd.s32 4294967294, %s2147_s21   ;;  %s2147_s21 = sphi %s2198_s21, %s2705_s21   ;;  %s2143_s20 = sphi %s2196_s20, %s2704_s20   ;;  %s2139_s19 = sphi %s2194_s19, %s2703_s19   ;;  %s2135_s18 = sphi %s2192_s18, %s2702_s18  }
   0x7   : > { %p42_p0 = scmp.ne.s32.totalorder %s2139_s19, %s2135_s18  ;;  %p2686_p1 = scmp.eq.s32.totalorder %s2213_s22, 0 }
   0x8   : > { %p156_p3 = scmp.eq.s32.totalorder %s1579_s23, 1  ;;  %p1580_p5 = scmp.ge.s32.totalorder %s2147_s21, 1 }
   0x9   : > { %p2222_p4 = por %p2686_p1, %p42_p0  ;;  %p163_p7 = scmp.lt.s32.totalorder %s2147_s21, 3 }
   0xa   : > { %p2227_p6 = por %p156_p3, %p42_p0  ;;  %s2149_s27 = smov [#allocation6]  }
   0xb   : > { %s2689_s24 = scalar_select %p2222_p4, 1, 0 }
   0xc   : > { %s2690_s25 = scalar_select %p2227_p6, 1, 0 }
   0xd   : > { %p2232_p8 = pnand %p1580_p5, %p163_p7  ;;  %s175_s28 = sshll.u32 %s2149_s27, 4  ;;  %s2236_s28 = int_to_ptr.vmem [resolvable:$true] %s175_s28 }
   0xe   : > { %s2150_s30 = smov [#allocation8]   ;;  %s1991_s9 = scalar_lea.hbm %s2681_s1, 13824 }
   0xf   : > { %p1927_p9 = pneg %p2232_p8  ;;  %s191_s6 = sshll.u32 %s2150_s30, 4  ;;  %s2247_s6 = int_to_ptr.vmem [resolvable:$true] %s191_s6 }
  0x10   : > { %p1992_p12 = scmp.ne.s32.totalorder %s2681_s1, %s1991_s9  ;;  %p1998_p5 = scmp.lt.u32.totalorder %s1991_s9, %s2681_s1 }
  0x11   : > { %p2243_p11 = pnand %p1927_p9, %p2686_p1 }
  0x13   : > { %p1993_p13 = pneg %p2243_p11 }
  0x15   : > { %p1994_p0 = pnand %p1993_p13, %p1992_p12 }
  0x17   : > { %p1995_p3 = pneg %p1994_p0 }
  0x19   : > { %p2000_p7 = pnand %p1998_p5, %p1995_p3 }
  0x1b   : > { %2003 = shalt.err (!%p2000_p7)
}
  0x1c   : > { %s2004_s14 = scalar_lea.vmem %s2236_s28, 13824  ;;  %p2012_p2 = scmp.lt.s32.totalorder %s2236_s28, %s2236_s28 }
  0x1d   : > { %p2005_p9 = scmp.ne.s32.totalorder %s2236_s28, %s2004_s14  ;;  %p2013_p12 = scmp.lt.s32.totalorder %s2004_s14, %s2004_s14 }
  0x1f   : > { %p2007_p10 = pnand %p2005_p9, %p1993_p13  ;;  %p2014_p0 = por %p2013_p12, %p2012_p2 }
  0x21   : > { %p2008_p1 = pneg %p2007_p10 }
  0x23   : > { %p2015_p6 = pnand %p2014_p0, %p2008_p1 }
  0x25   : > { %2018 = shalt.err (!%p2015_p6)
}
  0x26   : > { %s2151_s15 = smov 128   ;;  %s2152_s16 = smov 8  }
  0x27   : > { %1930 = dma.hbm_to_vmem [thread:$0]  (!%p2243_p11), %s2681_s1, 13824, %s2236_s28, [#allocation7], %s2151_s15, %s2151_s15, %s2152_s16  }
  0x28   : > { %s2019_s7 = scalar_lea.hbm %s2683_s3, 13824 }
  0x29   : > { %p2020_p1 = scmp.ne.s32.totalorder %s2683_s3, %s2019_s7  ;;  %p2026_p10 = scmp.lt.u32.totalorder %s2019_s7, %s2683_s3 }
  0x2b   : > { %p2022_p2 = pnand %p2020_p1, %p1993_p13 }
  0x2d   : > { %p2023_p6 = pneg %p2022_p2 }
  0x2f   : > { %p2028_p3 = pnand %p2026_p10, %p2023_p6 }
  0x31   : > { %2031 = shalt.err (!%p2028_p3)
}
  0x32   : > { %s2032_s28 = scalar_lea.vmem %s2247_s6, 13824  ;;  %p2040_p12 = scmp.lt.s32.totalorder %s2247_s6, %s2247_s6 }
  0x33   : > { %p2033_p5 = scmp.ne.s32.totalorder %s2247_s6, %s2032_s28  ;;  %p2041_p0 = scmp.lt.s32.totalorder %s2032_s28, %s2032_s28 }
  0x35   : > { %p2035_p7 = pnand %p2033_p5, %p1993_p13  ;;  %p2042_p1 = por %p2041_p0, %p2040_p12 }
  0x37   : > { %p2036_p9 = pneg %p2035_p7 }
  0x39   : > { %p2043_p2 = pnand %p2042_p1, %p2036_p9 }
  0x3b   : > { %2046 = shalt.err (!%p2043_p2)
}
  0x3c   : > { %s2153_s12 = smov 256   ;;  %s2154_s13 = smov 16  }
  0x3d   : > { %1933 = dma.hbm_to_vmem [thread:$0]  (!%p2243_p11), %s2683_s3, 13824, %s2247_s6, [#allocation7], %s2153_s12, %s2153_s12, %s2154_s13  }
  0x3e   : > { %s2305_s23 = sadd.s32 1, %s2147_s21   ;;  %s29_s30 = sadd.s32 1, %s2143_s20 }
  0x3f   : > { %s26_s27 = ssub.s32 %s2147_s21, %s2305_s23  ;;  %p36_p6 = scmp.ne.s32.totalorder %s2143_s20, %s2139_s19 }
  0x40   : > { %p27_p13 = scmp.eq.s32.totalorder %s26_s27, 0  ;;  %p37_p10 = scmp.eq.s32.totalorder %s2147_s21, 0 }
  0x41   : > { %p2693_p5 = scmp.eq.s32.totalorder %s2213_s22, 1  ;;  %p1944_p9 = scmp.lt.s32.totalorder %s2147_s21, 2 }
  0x42   : > { %s2314_s7 = scalar_select %p27_p13, %s2143_s20, %s29_s30  }
  0x43   : > { %p38_p3 = por %p37_p10, %p36_p6  ;;  %p2318_p7 = por %p2693_p5, %p36_p6 }
  0x44   : > { %s208_s29 = sand.u32 1, %s2143_s20   ;;  %s1617_s6 = sshll.u32 %s2147_s21, 8 }
  0x45   : > { %s2694_s8 = scalar_select %p2318_p7, 1, 0 }
  0x46   : > { %s1584_s9 = sshll.u32 %s208_s29, 4  ;;  %s2328_s28 = scalar_lea.hbm %s2680_s0, %s1617_s6 }
  0x47   : > { %s212_s12 = scalar_lea.vmem [#allocation3], %s1584_s9  ;;  %p2332_p11 = pnand %p1944_p9, %p38_p3 }
  0x48   : > { %s219_s13 = sshll.u32 %s212_s12, 4  ;;  %s2336_s17 = scalar_lea.sflag [#allocation4], %s208_s29  ;;  %s2330_s13 = int_to_ptr.vmem [resolvable:$true] %s219_s13 }
  0x49   : > { %s2047_s27 = scalar_lea.hbm %s2328_s28, 256  ;;  %p2049_p0 = pneg %p2332_p11 }
  0x4a   : > { %p2048_p12 = scmp.ne.s32.totalorder %s2328_s28, %s2047_s27  ;;  %s2052_s6 = scalar_lea.hbm %s2680_s0, 512 }
  0x4b   : > { %p2053_p13 = scmp.lt.u32.totalorder %s2328_s28, %s2680_s0  ;;  %p2054_p6 = scmp.lt.u32.totalorder %s2052_s6, %s2047_s27 }
  0x4c   : > { %p2050_p1 = pnand %p2049_p0, %p2048_p12  ;;  %p2056_p3 = scmp.lt.u32.totalorder %s2047_s27, %s2328_s28 }
  0x4d   : > { %p2055_p10 = por %p2054_p6, %p2053_p13 }
  0x4e   : > { %p2051_p2 = pneg %p2050_p1 }
  0x4f   : > { %p2057_p5 = por %p2056_p3, %p2055_p10 }
  0x51   : > { %p2058_p9 = pnand %p2057_p5, %p2051_p2 }
  0x53   : > { %2061 = shalt.err (!%p2058_p9)
}
  0x54   : > { %s2062_s29 = scalar_lea.vmem %s2330_s13, 256  ;;  %s2155_s12 = smov [#allocation3]  }
  0x55   : > { %p2063_p12 = scmp.ne.s32.totalorder %s2330_s13, %s2062_s29  ;;  %s2067_s30 = sshll.u32 %s2155_s12, 4  ;;  %s2068_s30 = int_to_ptr.vmem [resolvable:$false] %s2067_s30 }
  0x56   : > { %s2069_s9 = scalar_lea.vmem %s2068_s30, 512  ;;  %p2070_p4 = scmp.lt.s32.totalorder %s2330_s13, %s2068_s30 }
  0x57   : > { %p2065_p1 = pnand %p2063_p12, %p2049_p0  ;;  %p2071_p13 = scmp.lt.s32.totalorder %s2069_s9, %s2062_s29 }
  0x59   : > { %p2066_p7 = pneg %p2065_p1  ;;  %p2072_p6 = por %p2071_p13, %p2070_p4 }
  0x5b   : > { %p2073_p10 = pnand %p2072_p6, %p2066_p7 }
  0x5d   : > { %2076 = shalt.err (!%p2073_p10)
}
  0x5e   : > { %1937 = dma.hbm_to_vmem [thread:$0]  (!%p2332_p11), %s2328_s28, 256, %s2330_s13, %s2336_s17, %s2151_s15, %s2151_s15, %s2152_s16  }
  0x5f   : > { %231 = sbr.rel (%p2232_p8) target bundleno = 1326 (0x52e), region = 40  ;;  %s2370_s27 = sand.u32 (!%p2232_p8), 1, %s2139_s19  }
  0x60   : > { %s1588_s6 = sshll.u32 (!%p2232_p8), %s2370_s27, 4  ;;  %s234_s10 = scalar_lea.sflag (!%p2232_p8), [#allocation4], %s2370_s27 }
  0x61   : > { %s237_s11 = scalar_lea.vmem (!%p2232_p8), [#allocation3], %s1588_s6  ;;  %p2696_p4 = scmp.ne.s32.totalorder (!%p2232_p8), %s2689_s24, 0 }
  0x66   : > { %2122 = dma.done.wait (%p2696_p4), %s234_s10, 256  }
  0x67   : > { %2124 = vsyncadd (%p2696_p4), %s234_s10, 4294967040  ;;  %p2697_p7 = scmp.eq.s32.totalorder %s2213_s22, 0 }
  0x69   : > { %2126 = dma.done.wait (%p2697_p7), [#allocation7], 27648   ;;  %p2698_p11 = pmov %p2697_p7 }
  0x6a   : > { %v2156_v0 = vmov 0.0|0.0   ;;  %vm273_vm0 = vcmask 130048   ;;  %v2157_v1 = vmov 0.0   ;;  %vm278_vm1 = vcmask 123904   ;;  %v280_v2 = vld [vmem:[%s237_s11] sm:$0xff]  ;;  %v281_v3 = vld [vmem:[%s237_s11 + $0x8] sm:$0xff] }
  0x6b   : > { %2128 = vsyncadd (%p2698_p11), [#allocation7], 4294939648  ;;  %1619 = vmatprep.subr.bf16.mxu1 %v2156_v0  ;;  %1673 = vmatprep.subr.bf16.mxu0 %v2156_v0  ;;  %272 = vst [vmem:[#allocation2] sm:$0xff] %v2157_v1  ;;  %v327_v4 = vld [vmem:[#allocation6 + $0x90] sm:$0xff]  ;;  %v285_v5 = vrot.slane %v280_v2, 7  ;;  %v286_v6 = vrot.slane %v281_v3, 7 }
  0x6c   : > { %275 = vst [vmem:[#allocation2 + $0x10] sm:$0xff] %v2157_v1  ;;  %277 = vst [vmem:[#allocation2 + $0x20] sm:$0x3] %v2157_v1  ;;  %vm284_vm2 = vcmask 1040384   ;;  %v328_v7 = vld [vmem:[#allocation6 + $0x98] sm:$0xff]  ;;  %v345_v8 = vld [vmem:[#allocation6 + $0x120] sm:$0xff] }
  0x6d   : > { %274 = vst.msk [vmem:[#allocation2 + $0x8] sm:$0xff] %vm273_vm0, %v2157_v1  ;;  %276 = vst.msk [vmem:[#allocation2 + $0x18] sm:$0xff] %vm273_vm0, %v2157_v1  ;;  %v346_v9 = vld [vmem:[#allocation6 + $0x128] sm:$0xff]  ;;  %v1620_v10 = vpack.c.bf16 %v328_v7, %v327_v4  ;;  %v329_v12 = vld [vmem:[#allocation6 + $0xa0] sm:$0xff]  ;;  %s2158_s24 = smov 8   ;;  %v287_v16 = vsel %vm284_vm2, %v285_v5, %v286_v6  ;;  %vm297_vm3 = vcmask 1047617  }
  0x6e   : > { %279 = vst.msk [vmem:[#allocation2 + $0x28] sm:$0x3] %vm278_vm1, %v2157_v1  ;;  %v1674_v11 = vpack.c.bf16 %v346_v9, %v345_v8  ;;  %v330_v13 = vld [vmem:[#allocation6 + $0xa8] sm:$0xff]  ;;  %v347_v14 = vld [vmem:[#allocation6 + $0x130] sm:$0xff]  ;;  %288 = vrot.lane.b32.xlu0 %v285_v5, %s2158_s24  ;;  %292 = vrot.lane.b32.xlu1 %v286_v6, %s2158_s24  ;;  %v348_v15 = vld [vmem:[#allocation6 + $0x138] sm:$0xff]  ;;  %vm299_vm4 = vcmask 64513  }
  0x6f   : > { %1621 = vmatpush1.bf16.msra.mxu1 %v1620_v10  ;;  %v1623_v17 = vpack.c.bf16 %v330_v13, %v329_v12  ;;  %v1677_v18 = vpack.c.bf16 %v348_v15, %v347_v14  ;;  %v331_v19 = vld [vmem:[#allocation6 + $0xb0] sm:$0xff]  ;;  %v332_v20 = vld [vmem:[#allocation6 + $0xb8] sm:$0xff]  ;;  %v349_v21 = vld [vmem:[#allocation6 + $0x140] sm:$0xff]  ;;  %vm305_vm5 = vcmask 1040448   ;;  %vm307_vm6 = vcmask 57344   ;;  %s1591_s17 = sshll.u32 %s2370_s27, 5 }
  0x70   : > { %1675 = vmatpush1.bf16.msra.mxu0 %v1674_v11  ;;  %1622 = vmatprep.subr.bf16.mxu1 %v2156_v0  ;;  %v350_v22 = vld [vmem:[#allocation6 + $0x148] sm:$0xff]  ;;  %v1626_v23 = vpack.c.bf16 %v332_v20, %v331_v19  ;;  %v333_v25 = vld [vmem:[#allocation6 + $0xc0] sm:$0xff]  ;;  %v351_v27 = vld [vmem:[#allocation6 + $0x150] sm:$0xff]  ;;  %vm301_vm7 = vcmask 1047616   ;;  %vm303_vm8 = vcmask 64512   ;;  %vm378_vm9 = vcmask 1046528  }
  0x71   : > { %1676 = vmatprep.subr.bf16.mxu0 %v2156_v0  ;;  %v1680_v24 = vpack.c.bf16 %v350_v22, %v349_v21  ;;  %v334_v26 = vld [vmem:[#allocation6 + $0xc8] sm:$0xff]  ;;  %v352_v28 = vld [vmem:[#allocation6 + $0x158] sm:$0xff]  ;;  %v335_v31 = vld [vmem:[#allocation6 + $0xd0] sm:$0xff]  ;;  %vm558_vm10 = vcmask 1045504   ;;  %vm1469_vm11 = vcmask 523264   ;;  %s271_s29 = scalar_lea.vmem [#allocation9], %s1591_s17 }
  0x72   : > { %290 = vrot.lane.b32.xlu0 %v287_v16, %s2158_s24  ;;  %v1629_v29 = vpack.c.bf16 %v334_v26, %v333_v25  ;;  %v1683_v30 = vpack.c.bf16 %v352_v28, %v351_v27  ;;  %v336_v32 = vld [vmem:[#allocation6 + $0xd8] sm:$0xff]  ;;  %v353_v33 = vld [vmem:[#allocation6 + $0x160] sm:$0xff]  ;;  %v354_v34 = vld [vmem:[#allocation6 + $0x168] sm:$0xff]  ;;  %s1487_s12 = sshll.u32 %s271_s29, 4  ;;  %s1618_s30 = sshll.u32 %s2213_s22, 9  ;;  %s2631_s12 = int_to_ptr.vmem [resolvable:$true] %s1487_s12 }
  0x73   : > { %1624 = vmatpush1.bf16.msra.mxu1 %v1623_v17  ;;  %v1632_v35 = vpack.c.bf16 %v336_v32, %v335_v31  ;;  %v1686_v36 = vpack.c.bf16 %v354_v34, %v353_v33  ;;  %v337_v37 = vld [vmem:[#allocation6 + $0xe0] sm:$0xff]  ;;  %v338_v38 = vld [vmem:[#allocation6 + $0xe8] sm:$0xff]  ;;  %v355_v39 = vld [vmem:[#allocation6 + $0x170] sm:$0xff]  ;;  %s2636_s10 = scalar_lea.hbm %s2685_s5, %s1618_s30  ;;  %s1474_s11 = scalar_lea.sflag [#allocation5], %s2370_s27 }
  0x74   : > { %1678 = vmatpush1.bf16.msra.mxu0 %v1677_v18  ;;  %1625 = vmatprep.subr.bf16.mxu1 %v2156_v0  ;;  %v356_v40 = vld [vmem:[#allocation6 + $0x178] sm:$0xff]  ;;  %v1635_v41 = vpack.c.bf16 %v338_v38, %v337_v37  ;;  %v339_v43 = vld [vmem:[#allocation6 + $0xf0] sm:$0xff]  ;;  %v357_v45 = vld [vmem:[#allocation6 + $0x180] sm:$0xff]  ;;  %p2699_p0 = scmp.ne.s32.totalorder %s2694_s8, 0  ;;  %s2159_s22 = smov [#allocation9]  }
  0x75   : > { %1679 = vmatprep.subr.bf16.mxu0 %v2156_v0  ;;  %v1689_v42 = vpack.c.bf16 %v356_v40, %v355_v39  ;;  %v340_v44 = vld [vmem:[#allocation6 + $0xf8] sm:$0xff]  ;;  %v358_v46 = vld [vmem:[#allocation6 + $0x188] sm:$0xff]  ;;  %v341_v49 = vld [vmem:[#allocation6 + $0x100] sm:$0xff]  ;;  %s2081_s26 = sshll.u32 %s2159_s22, 4  ;;  %s2082_s26 = int_to_ptr.vmem [resolvable:$false] %s2081_s26 }
  0x76   : > { %v1638_v47 = vpack.c.bf16 %v340_v44, %v339_v43  ;;  %v1692_v48 = vpack.c.bf16 %v358_v46, %v357_v45  ;;  %v342_v50 = vld [vmem:[#allocation6 + $0x108] sm:$0xff]  ;;  %v359_v51 = vld [vmem:[#allocation6 + $0x190] sm:$0xff]  ;;  %v360_v52 = vld [vmem:[#allocation6 + $0x198] sm:$0xff]  ;;  %s2083_s15 = scalar_lea.vmem %s2082_s26, 1024  ;;  %p2084_p5 = scmp.lt.s32.totalorder %s2631_s12, %s2082_s26 }
  0x77   : > { %1627 = vmatpush1.bf16.msra.mxu1 %v1626_v23  ;;  %v1641_v53 = vpack.c.bf16 %v342_v50, %v341_v49  ;;  %v1695_v54 = vpack.c.bf16 %v360_v52, %v359_v51  ;;  %v343_v55 = vld [vmem:[#allocation6 + $0x110] sm:$0xff]  ;;  %v344_v56 = vld [vmem:[#allocation6 + $0x118] sm:$0xff]  ;;  %v361_v57 = vld [vmem:[#allocation6 + $0x1a0] sm:$0xff] }
  0x78   : > { %1681 = vmatpush1.bf16.msra.mxu0 %v1680_v24  ;;  %1628 = vmatprep.subr.bf16.mxu1 %v2156_v0  ;;  %v362_v58 = vld [vmem:[#allocation6 + $0x1a8] sm:$0xff]  ;;  %v1644_v59 = vpack.c.bf16 %v344_v56, %v343_v55  ;;  %v309_v5 = vld [vmem:[#allocation6] sm:$0xff]  ;;  %v311_v28 = vld [vmem:[#allocation6 + $0x10] sm:$0xff] }
  0x79   : > { %1682 = vmatprep.subr.bf16.mxu0 %v2156_v0  ;;  %v1698_v60 = vpack.c.bf16 %v362_v58, %v361_v57  ;;  %v310_v10 = vld [vmem:[#allocation6 + $0x8] sm:$0xff]  ;;  %v317_v44 = vld [vmem:[#allocation6 + $0x40] sm:$0xff] }
  0x7a   : > { %v1647_v22 = vpack.c.bf16 %v310_v10, %v309_v5  ;;  %v318_v45 = vld [vmem:[#allocation6 + $0x48] sm:$0xff]  ;;  %v321_v50 = vld [vmem:[#allocation6 + $0x60] sm:$0xff]  ;;  %v701_v5 = vld [vmem:[#allocation6 + $0x250] sm:$0xff] }
  0x7b   : > { %1630 = vmatpush1.bf16.msra.mxu1 %v1629_v29  ;;  %v312_v29 = vld [vmem:[#allocation6 + $0x18] sm:$0xff]  ;;  %v1659_v46 = vpack.c.bf16 %v318_v45, %v317_v44  ;;  %v322_v51 = vld [vmem:[#allocation6 + $0x68] sm:$0xff]  ;;  %v325_v56 = vld [vmem:[#allocation6 + $0x80] sm:$0xff] }
  0x7c   : > { %1684 = vmatpush1.bf16.msra.mxu0 %v1683_v30  ;;  %1631 = vmatprep.subr.bf16.mxu1 %v2156_v0  ;;  %v1650_v34 = vpack.c.bf16 %v312_v29, %v311_v28  ;;  %v1665_v52 = vpack.c.bf16 %v322_v51, %v321_v50  ;;  %v326_v57 = vld [vmem:[#allocation6 + $0x88] sm:$0xff]  ;;  %v695_v44 = vld [vmem:[#allocation6 + $0x220] sm:$0xff] }
  0x7d   : > { %1685 = vmatprep.subr.bf16.mxu0 %v2156_v0  ;;  %v1671_v58 = vpack.c.bf16 %v326_v57, %v325_v56  ;;  %v696_v45 = vld [vmem:[#allocation6 + $0x228] sm:$0xff]  ;;  %v711_v50 = vld [vmem:[#allocation6 + $0x2a0] sm:$0xff] }
  0x7e   : > { %v712_v51 = vld [vmem:[#allocation6 + $0x2a8] sm:$0xff] }
  0x7f   : > { %1633 = vmatpush1.bf16.msra.mxu1 %v1632_v35  ;;  %v313_v35 = vld [vmem:[#allocation6 + $0x20] sm:$0xff] }
  0x80   : > { %1687 = vmatpush1.bf16.msra.mxu0 %v1686_v36  ;;  %1634 = vmatprep.subr.bf16.mxu1 %v2156_v0  ;;  %v314_v36 = vld [vmem:[#allocation6 + $0x28] sm:$0xff] }
  0x81   : > { %1688 = vmatprep.subr.bf16.mxu0 %v2156_v0  ;;  %v1653_v40 = vpack.c.bf16 %v314_v36, %v313_v35 }
  0x83   : > { %1636 = vmatpush1.bf16.msra.mxu1 %v1635_v41  ;;  %v315_v41 = vld [vmem:[#allocation6 + $0x30] sm:$0xff] }
  0x84   : > { %1690 = vmatpush1.bf16.msra.mxu0 %v1689_v42  ;;  %1637 = vmatprep.subr.bf16.mxu1 %v2156_v0  ;;  %v316_v42 = vld [vmem:[#allocation6 + $0x38] sm:$0xff] }
  0x85   : > { %1691 = vmatprep.subr.bf16.mxu0 %v2156_v0  ;;  %v1656_v43 = vpack.c.bf16 %v316_v42, %v315_v41  ;;  %v709_v41 = vld [vmem:[#allocation6 + $0x290] sm:$0xff]  ;;  %v710_v42 = vld [vmem:[#allocation6 + $0x298] sm:$0xff] }
  0x87   : > { %1639 = vmatpush1.bf16.msra.mxu1 %v1638_v47  ;;  %v319_v47 = vld [vmem:[#allocation6 + $0x50] sm:$0xff] }
  0x88   : > { %1693 = vmatpush1.bf16.msra.mxu0 %v1692_v48  ;;  %1640 = vmatprep.subr.bf16.mxu1 %v2156_v0  ;;  %v320_v48 = vld [vmem:[#allocation6 + $0x58] sm:$0xff] }
  0x89   : > { %1694 = vmatprep.subr.bf16.mxu0 %v2156_v0  ;;  %v1662_v49 = vpack.c.bf16 %v320_v48, %v319_v47 }
  0x8b   : > { %1642 = vmatpush1.bf16.msra.mxu1 %v1641_v53  ;;  %v323_v53 = vld [vmem:[#allocation6 + $0x70] sm:$0xff] }
  0x8c   : > { %1696 = vmatpush1.bf16.msra.mxu0 %v1695_v54  ;;  %1643 = vmatprep.subr.bf16.mxu1 %v2156_v0  ;;  %v324_v54 = vld [vmem:[#allocation6 + $0x78] sm:$0xff] }
  0x8d   : > { %1697 = vmatprep.subr.bf16.mxu0 %v2156_v0  ;;  %v1668_v55 = vpack.c.bf16 %v324_v54, %v323_v53  ;;  %v1719_v53 = vpack.c.bf16 %v712_v51, %v711_v50  ;;  %v697_v54 = vld [vmem:[#allocation6 + $0x230] sm:$0xff]  ;;  %v726_v50 = vld [vmem:[#allocation6 + $0x318] sm:$0xff] }
  0x8f   : > { %1645 = vmatpush1.bf16.msra.mxu1 %v1644_v59 }
  0x90   : > { %1699 = vmatpush1.bf16.msra.mxu0 %v1698_v60  ;;  %1646 = vmatprep.subr.bf16.mxu1 %v2156_v0  ;;  %v681_v60 = vld [vmem:[#allocation6 + $0x1b0] sm:$0xff] }
  0x91   : > { %1727 = vmatprep.subr.bf16.mxu0 %v2156_v0 }
  0xe0   : > { %v289_v61 = vpop.permute.xlu0 %288  ;;  %v293_v62 = vpop.permute.xlu1 %292 }
  0xe1   : > { %298 = vst.msk [vmem:[#allocation2] sm:$0xfe] %vm297_vm3, %v289_v61 }
  0xe2   : > { %300 = vst.msk [vmem:[#allocation2 + $0x8] sm:$0xfe] %vm299_vm4, %v289_v61  ;;  %v682_v61 = vld [vmem:[#allocation6 + $0x1b8] sm:$0xff] }
  0xe3   : > { %306 = vst.msk [vmem:[#allocation2 + $0x20] sm:$0x1] %vm305_vm5, %v293_v62 }
  0xe4   : > { %308 = vst.msk [vmem:[#allocation2 + $0x28] sm:$0x1] %vm307_vm6, %v293_v62  ;;  %v291_v63 = vpop.permute.xlu0 %290  ;;  %v683_v62 = vld [vmem:[#allocation6 + $0x1c0] sm:$0xff] }
  0xe5   : > { %302 = vst.msk [vmem:[#allocation2 + $0x10] sm:$0xff] %vm301_vm7, %v291_v63 }
  0xe6   : > { %304 = vst.msk [vmem:[#allocation2 + $0x18] sm:$0xff] %vm303_vm8, %v291_v63  ;;  %v1728_v63 = vpack.c.bf16 %v682_v61, %v681_v60 }
  0xe8   : > { %v368_v3 = vld [vmem:[#allocation2] sm:$0xfe] }
  0xe9   : > { %v369_v1 = vld [vmem:[#allocation2 + $0x8] sm:$0xfe]  ;;  %v550_v4 = vld [vmem:[#allocation2] sm:$0xfc]  ;;  %v379_v9 = vrot.slane %v368_v3, 1  ;;  %v700_v3 = vld [vmem:[#allocation6 + $0x248] sm:$0xff] }
  0xea   : > { %v551_v2 = vld [vmem:[#allocation2 + $0x8] sm:$0xfc]  ;;  %v382_v7 = vrot.slane %v369_v1, 1  ;;  %v559_v14 = vrot.slane %v550_v4, 2  ;;  %v370_v16 = vld [vmem:[#allocation2 + $0x20] sm:$0x1] }
  0xeb   : > { %v371_v6 = vld [vmem:[#allocation2 + $0x28] sm:$0x1]  ;;  %v562_v8 = vrot.slane %v551_v2, 2  ;;  %v552_v21 = vld [vmem:[#allocation2 + $0x20] sm:$0x3]  ;;  %v385_v30 = vrot.slane %v370_v16, 1 }
  0xec   : > { %v553_v11 = vld [vmem:[#allocation2 + $0x28] sm:$0x3]  ;;  %v2416_v13 = vld [vmem:[#allocation2 + $0x10] sm:$0xff]  ;;  %v387_v15 = vrot.slane %v371_v6, 1  ;;  %v565_v31 = vrot.slane %v552_v21, 2  ;;  %v364_v59 = vld [vmem:[#allocation2] sm:$0xff] }
  0xed   : > { %v2414_v12 = vld [vmem:[#allocation2 + $0x18] sm:$0xff]  ;;  %v380_v19 = vrot.slane %v2416_v13, 1  ;;  %v560_v20 = vrot.slane %v2416_v13, 2  ;;  %v567_v23 = vrot.slane %v553_v11, 2  ;;  %v365_v39 = vld [vmem:[#allocation2 + $0x8] sm:$0xff]  ;;  %v699_v2 = vld [vmem:[#allocation6 + $0x240] sm:$0xff] }
  0xee   : > { %v383_v17 = vrot.slane %v2414_v12, 1  ;;  %v563_v18 = vrot.slane %v2414_v12, 2  ;;  %v684_v1 = vld [vmem:[#allocation6 + $0x1c8] sm:$0xff]  ;;  %v1701_v4 = vpack.c.bf16 %v700_v3, %v699_v2  ;;  %v703_v11 = vld [vmem:[#allocation6 + $0x260] sm:$0xff]  ;;  %v690_v21 = vld [vmem:[#allocation6 + $0x1f8] sm:$0xff] }
  0xef   : > { %v381_v26 = vsel %vm378_vm9, %v379_v9, %v380_v19  ;;  %v561_v27 = vsel %vm558_vm10, %v559_v14, %v560_v20  ;;  %v386_v37 = vsel %vm378_vm9, %v380_v19, %v385_v30  ;;  %v566_v38 = vsel %vm558_vm10, %v560_v20, %v565_v31  ;;  %v686_v9 = vld [vmem:[#allocation6 + $0x1d8] sm:$0xff]  ;;  %v687_v14 = vld [vmem:[#allocation6 + $0x1e0] sm:$0xff]  ;;  %v689_v20 = vld [vmem:[#allocation6 + $0x1f0] sm:$0xff] }
  0xf0   : > { %v384_v24 = vsel %vm378_vm9, %v382_v7, %v383_v17  ;;  %v564_v25 = vsel %vm558_vm10, %v562_v8, %v563_v18  ;;  %v388_v32 = vsel %vm378_vm9, %v383_v17, %v387_v15  ;;  %v568_v33 = vsel %vm558_vm10, %v563_v18, %v567_v23  ;;  %v702_v7 = vld [vmem:[#allocation6 + $0x258] sm:$0xff]  ;;  %v685_v8 = vld [vmem:[#allocation6 + $0x1d0] sm:$0xff]  ;;  %v688_v15 = vld [vmem:[#allocation6 + $0x1e8] sm:$0xff] }
  0xf1   : > { %1592 = vmatprep.mubr.msk.f32.mxu1 %vm273_vm0, %v384_v24  ;;  %1596 = vmatprep.mubr.msk.f32.mxu0 %vm273_vm0, %v564_v25  ;;  %v1731_v6 = vpack.c.bf16 %v684_v1, %v683_v62  ;;  %v1704_v10 = vpack.c.bf16 %v702_v7, %v701_v5  ;;  %v705_v17 = vld [vmem:[#allocation6 + $0x270] sm:$0xff]  ;;  %v706_v18 = vld [vmem:[#allocation6 + $0x278] sm:$0xff]  ;;  %v1737_v19 = vpack.c.bf16 %v688_v15, %v687_v14  ;;  %v707_v23 = vld [vmem:[#allocation6 + $0x280] sm:$0xff] }
  0xf2   : > { %460 = vmatmul.mubr.f32.vlgmr.msra.gmra.mrb[0].mxu1 %v381_v26  ;;  %640 = vmatmul.mubr.f32.vlgmr.msra.gmra.mrb[0].mxu0 %v561_v27  ;;  %v708_v24 = vld [vmem:[#allocation6 + $0x288] sm:$0xff]  ;;  %v1740_v25 = vpack.c.bf16 %v690_v21, %v689_v20  ;;  %v691_v26 = vld [vmem:[#allocation6 + $0x200] sm:$0xff]  ;;  %v693_v30 = vld [vmem:[#allocation6 + $0x210] sm:$0xff] }
  0xf3   : > { %1648 = vmatpush1.bf16.msra.mxu1 %v1647_v22  ;;  %1593 = vmatprep.mubr.msk.f32.mxu1 %vm273_vm0, %v388_v32  ;;  %v1710_v22 = vpack.c.bf16 %v706_v18, %v705_v17  ;;  %v692_v27 = vld [vmem:[#allocation6 + $0x208] sm:$0xff]  ;;  %v1713_v28 = vpack.c.bf16 %v708_v24, %v707_v23  ;;  %v694_v31 = vld [vmem:[#allocation6 + $0x218] sm:$0xff]  ;;  %v713_v62 = vld [vmem:[#allocation6 + $0x2b0] sm:$0xff] }
  0xf4   : > { %1597 = vmatprep.mubr.msk.f32.mxu0 %vm273_vm0, %v568_v33  ;;  %1649 = vmatprep.subr.bf16.mxu1 %v2156_v0  ;;  %v1743_v29 = vpack.c.bf16 %v692_v27, %v691_v26  ;;  %v1746_v32 = vpack.c.bf16 %v694_v31, %v693_v30  ;;  %v716_v5 = vld [vmem:[#allocation6 + $0x2c8] sm:$0xff]  ;;  %v718_v20 = vld [vmem:[#allocation6 + $0x2d8] sm:$0xff] }
  0xf5   : > { %1729 = vmatpush1.bf16.msra.mxu0 %v1728_v63  ;;  %v714_v63 = vld [vmem:[#allocation6 + $0x2b8] sm:$0xff] }
  0xf6   : > { %465 = vmatmul.mubr.f32.gmra.mrb[2].mxu1 %v386_v37  ;;  %645 = vmatmul.mubr.f32.gmra.mrb[2].mxu0 %v566_v38  ;;  %v1722_v1 = vpack.c.bf16 %v714_v63, %v713_v62  ;;  %v734_v62 = vld [vmem:[#allocation6 + $0x358] sm:$0xff] }
  0xf7   : > { %1651 = vmatpush1.bf16.msra.mxu1 %v1650_v34  ;;  %1594 = vmatprep.mubr.msk.f32.mxu1 %vm273_vm0, %v365_v39 }
  0xf8   : > { %1652 = vmatprep.subr.bf16.mxu1 %v2156_v0  ;;  %1730 = vmatprep.subr.bf16.mxu0 %v2156_v0 }
  0xf9   : > { %1732 = vmatpush1.bf16.msra.mxu0 %v1731_v6 }
  0xfa   : > { %1733 = vmatprep.subr.bf16.mxu0 %v2156_v0 }
  0xfb   : > { %1654 = vmatpush1.bf16.msra.mxu1 %v1653_v40 }
  0xfc   : > { %1655 = vmatprep.subr.bf16.mxu1 %v2156_v0 }
  0xff   : > { %1657 = vmatpush1.bf16.msra.mxu1 %v1656_v43  ;;  %v1716_v43 = vpack.c.bf16 %v710_v42, %v709_v41  ;;  %v721_v41 = vld [vmem:[#allocation6 + $0x2f0] sm:$0xff]  ;;  %v722_v42 = vld [vmem:[#allocation6 + $0x2f8] sm:$0xff] }
 0x100   : > { %1658 = vmatprep.subr.bf16.mxu1 %v2156_v0 }
 0x103   : > { %1660 = vmatpush1.bf16.msra.mxu1 %v1659_v46  ;;  %v1749_v46 = vpack.c.bf16 %v696_v45, %v695_v44  ;;  %v1761_v45 = vpack.c.bf16 %v722_v42, %v721_v41  ;;  %v1130_v41 = vld [vmem:[#allocation8 + $0x280] sm:$0xff]  ;;  %v1132_v42 = vld [vmem:[#allocation8 + $0x290] sm:$0xff] }
 0x104   : > { %1661 = vmatprep.subr.bf16.mxu1 %v2156_v0 }
 0x107   : > { %1663 = vmatpush1.bf16.msra.mxu1 %v1662_v49 }
 0x108   : > { %1664 = vmatprep.subr.bf16.mxu1 %v2156_v0 }
 0x10b   : > { %1666 = vmatpush1.bf16.msra.mxu1 %v1665_v52  ;;  %v1598_v52 = vld [vmem:[%s2682_s2] ss:$0 sm:$0xff] }
 0x10c   : > { %1667 = vmatprep.subr.bf16.mxu1 %v2156_v0 }
 0x10f   : > { %1669 = vmatpush1.bf16.msra.mxu1 %v1668_v55  ;;  %v698_v55 = vld [vmem:[#allocation6 + $0x238] sm:$0xff] }
 0x110   : > { %1670 = vmatprep.subr.bf16.mxu1 %v2156_v0  ;;  %v1752_v57 = vpack.c.bf16 %v698_v55, %v697_v54  ;;  %v729_v55 = vld [vmem:[#allocation6 + $0x330] sm:$0xff] }
 0x113   : > { %1672 = vmatpush1.bf16.msra.mxu1 %v1671_v58 }
 0x114   : > { %1700 = vmatprep.subr.bf16.mxu1 %v2156_v0 }
 0x116   : > { %540 = vmatmul.mubr.f32.vlgmr.msra.gmra.mrb[4].mxu1 %v364_v59 }
 0x117   : > { %1595 = vmatprep.mubr.msk.f32.mxu1 %vm273_vm0, %v2414_v12  ;;  %1702 = vmatpush1.bf16.msra.mxu1 %v1701_v4  ;;  %v704_v12 = vld [vmem:[#allocation6 + $0x268] sm:$0xff]  ;;  %v715_v4 = vld [vmem:[#allocation6 + $0x2c0] sm:$0xff] }
 0x118   : > { %1703 = vmatprep.subr.bf16.mxu1 %v2156_v0  ;;  %v1707_v16 = vpack.c.bf16 %v704_v12, %v703_v11  ;;  %v1725_v6 = vpack.c.bf16 %v716_v5, %v715_v4 }
 0x11a   : > { %545 = vmatmul.mubr.f32.gmra.mrb[6].mxu1 %v2416_v13  ;;  %v1734_v13 = vpack.c.bf16 %v686_v9, %v685_v8 }
 0x11b   : > { %1705 = vmatpush1.bf16.msra.mxu1 %v1704_v10 }
 0x11c   : > { %1706 = vmatprep.subr.bf16.mxu1 %v2156_v0  ;;  %1735 = vmatpush1.bf16.msra.mxu0 %v1734_v13 }
 0x11d   : > { %1736 = vmatprep.subr.bf16.mxu0 %v2156_v0 }
 0x11f   : > { %1708 = vmatpush1.bf16.msra.mxu1 %v1707_v16 }
 0x120   : > { %1709 = vmatprep.subr.bf16.mxu1 %v2156_v0  ;;  %1738 = vmatpush1.bf16.msra.mxu0 %v1737_v19  ;;  %v717_v19 = vld [vmem:[#allocation6 + $0x2d0] sm:$0xff] }
 0x121   : > { %1739 = vmatprep.subr.bf16.mxu0 %v2156_v0  ;;  %v1755_v30 = vpack.c.bf16 %v718_v20, %v717_v19  ;;  %v1122_v19 = vld [vmem:[#allocation8 + $0x240] sm:$0xff]  ;;  %v1124_v20 = vld [vmem:[#allocation8 + $0x250] sm:$0xff] }
 0x123   : > { %1711 = vmatpush1.bf16.msra.mxu1 %v1710_v22 }
 0x124   : > { %1712 = vmatprep.subr.bf16.mxu1 %v2156_v0  ;;  %1741 = vmatpush1.bf16.msra.mxu0 %v1740_v25 }
 0x125   : > { %1742 = vmatprep.subr.bf16.mxu0 %v2156_v0 }
 0x127   : > { %1714 = vmatpush1.bf16.msra.mxu1 %v1713_v28 }
 0x128   : > { %1715 = vmatprep.subr.bf16.mxu1 %v2156_v0  ;;  %1744 = vmatpush1.bf16.msra.mxu0 %v1743_v29 }
 0x129   : > { %1745 = vmatprep.subr.bf16.mxu0 %v2156_v0 }
 0x12b   : > { %1717 = vmatpush1.bf16.msra.mxu1 %v1716_v43 }
 0x12c   : > { %1747 = vmatpush1.bf16.msra.mxu0 %v1746_v32  ;;  %1718 = vmatprep.subr.bf16.mxu1 %v2156_v0 }
 0x12d   : > { %1748 = vmatprep.subr.bf16.mxu0 %v2156_v0 }
 0x12f   : > { %1720 = vmatpush1.bf16.msra.mxu1 %v1719_v53  ;;  %v728_v53 = vld [vmem:[#allocation6 + $0x328] sm:$0xff] }
 0x130   : > { %1750 = vmatpush1.bf16.msra.mxu0 %v1749_v46  ;;  %1721 = vmatprep.subr.bf16.mxu1 %v2156_v0  ;;  %v723_v46 = vld [vmem:[#allocation6 + $0x300] sm:$0xff] }
 0x131   : > { %1751 = vmatprep.subr.bf16.mxu0 %v2156_v0 }
 0x133   : > { %1723 = vmatpush1.bf16.msra.mxu1 %v1722_v1 }
 0x134   : > { %1753 = vmatpush1.bf16.msra.mxu0 %v1752_v57  ;;  %1724 = vmatprep.subr.bf16.mxu1 %v2156_v0 }
 0x137   : > { %1726 = vmatpush1.bf16.msra.mxu1 %v1725_v6 }
 0x138   : > { %1754 = vmatprep.subr.bf16.mxu1 %v2156_v0 }
 0x1c5   : > { %v461_v33 = vpop.f32.mrb[0].mxu1  ;;  %v641_v34 = vpop.f32.mrb[0].mxu0 }
 0x1c6   : > { %v463_v35 = vpop.f32.mrb[1].mxu1  ;;  %v643_v36 = vpop.f32.mrb[1].mxu0 }
 0x1c9   : > { %v466_v37 = vpop.f32.mrb[2].mxu1  ;;  %v646_v38 = vpop.f32.mrb[2].mxu0 }
 0x1ca   : > { %v468_v39 = vpop.f32.mrb[3].mxu1  ;;  %v648_v40 = vpop.f32.mrb[3].mxu0 }
 0x1e9   : > { %v541_v47 = vpop.f32.mrb[4].mxu1 }
 0x1ea   : > { %v542_v48 = vadd.f32 %v541_v47, %v461_v33  ;;  %v543_v49 = vpop.f32.mrb[5].mxu1  ;;  %v719_v33 = vld [vmem:[#allocation6 + $0x2e0] sm:$0xff]  ;;  %v724_v47 = vld [vmem:[#allocation6 + $0x308] sm:$0xff] }
 0x1eb   : > { %v725_v49 = vld [vmem:[#allocation6 + $0x310] sm:$0xff] }
 0x1ec   : > { %v650_v56 = vadd.f32 %v641_v34, %v542_v48  ;;  %v720_v34 = vld [vmem:[#allocation6 + $0x2e8] sm:$0xff]  ;;  %v1764_v48 = vpack.c.bf16 %v724_v47, %v723_v46  ;;  %v1767_v51 = vpack.c.bf16 %v726_v50, %v725_v49  ;;  %v1101_v46 = vld [vmem:[#allocation8 + $0x198] sm:$0xff]  ;;  %v1098_v47 = vld [vmem:[#allocation8 + $0x180] sm:$0xff] }
 0x1ed   : > { %v546_v58 = vpop.f32.mrb[6].mxu1  ;;  %v1758_v39 = vpack.c.bf16 %v720_v34, %v719_v33  ;;  %v1095_v33 = vld [vmem:[#allocation8 + $0x168] sm:$0xff]  ;;  %v1097_v34 = vld [vmem:[#allocation8 + $0x178] sm:$0xff]  ;;  %v1100_v50 = vld [vmem:[#allocation8 + $0x190] sm:$0xff] }
 0x1ee   : > { %v656_v59 = vadd.f32 %v1598_v52, %v650_v56  ;;  %v547_v60 = vadd.f32 %v546_v58, %v466_v37  ;;  %v548_v61 = vpop.f32.mrb[7].mxu1  ;;  %v730_v56 = vld [vmem:[#allocation6 + $0x338] sm:$0xff]  ;;  %v731_v58 = vld [vmem:[#allocation6 + $0x340] sm:$0xff] }
 0x1ef   : > { %v1773_v57 = vpack.c.bf16 %v730_v56, %v729_v55  ;;  %v733_v61 = vld [vmem:[#allocation6 + $0x350] sm:$0xff]  ;;  %v1103_v56 = vld [vmem:[#allocation8 + $0x1a8] sm:$0xff] }
 0x1f0   : > { %v651_v2 = vadd.f32 %v646_v38, %v547_v60  ;;  %v658_v3 = vmax.f32 %v656_v59, 0.0  ;;  %v732_v59 = vld [vmem:[#allocation6 + $0x348] sm:$0xff]  ;;  %v1779_v63 = vpack.c.bf16 %v734_v62, %v733_v61  ;;  %v1136_v55 = vld [vmem:[#allocation8 + $0x2b0] sm:$0xff] }
 0x1f1   : > { %v1776_v60 = vpack.c.bf16 %v732_v59, %v731_v58  ;;  %v1795_v58 = vpack.c.bf16 %v1100_v50, %v1098_v47  ;;  %v1139_v59 = vld [vmem:[#allocation8 + $0x2c8] sm:$0xff] }
 0x1f2   : > { %v657_v7 = vadd.f32 %v1598_v52, %v651_v2  ;;  %v662_v8 = vrot.slane %v658_v3, 7  ;;  %v727_v52 = vld [vmem:[#allocation6 + $0x320] sm:$0xff]  ;;  %v1115_v50 = vld [vmem:[#allocation8 + $0x208] sm:$0xff] }
 0x1f3   : > { %v1770_v54 = vpack.c.bf16 %v728_v53, %v727_v52  ;;  %v1137_v52 = vld [vmem:[#allocation8 + $0x2b8] sm:$0xff] }
 0x1f4   : > { %665 = vrot.lane.b32.xlu1 %v662_v8, %s2158_s24  ;;  %v659_v9 = vmax.f32 %v657_v7, 0.0 }
 0x1f6   : > { %v663_v10 = vrot.slane %v659_v9, 7 }
 0x1f8   : > { %669 = vrot.lane.b32.xlu1 %v663_v10, %s2158_s24  ;;  %v664_v11 = vsel %vm284_vm2, %v662_v8, %v663_v10 }
 0x1f9   : > { %667 = vrot.lane.b32.xlu0 %v664_v11, %s2158_s24  ;;  %v1087_v11 = vld [vmem:[#allocation8 + $0x128] sm:$0xff] }
 0x266   : > { %v666_v12 = vpop.permute.xlu1 %665 }
 0x267   : > { %674 = vst.msk [vmem:[#allocation2] sm:$0xfe] %vm297_vm3, %v666_v12 }
 0x268   : > { %675 = vst.msk [vmem:[#allocation2 + $0x8] sm:$0xfe] %vm299_vm4, %v666_v12  ;;  %v1086_v12 = vld [vmem:[#allocation8 + $0x120] sm:$0xff] }
 0x26a   : > { %v670_v13 = vpop.permute.xlu1 %669 }
 0x26b   : > { %678 = vst.msk [vmem:[#allocation2 + $0x20] sm:$0x1] %vm305_vm5, %v670_v13  ;;  %v668_v14 = vpop.permute.xlu0 %667 }
 0x26c   : > { %679 = vst.msk [vmem:[#allocation2 + $0x28] sm:$0x1] %vm307_vm6, %v670_v13 }
 0x26d   : > { %676 = vst.msk [vmem:[#allocation2 + $0x10] sm:$0xff] %vm301_vm7, %v668_v14 }
 0x26e   : > { %677 = vst.msk [vmem:[#allocation2 + $0x18] sm:$0xff] %vm303_vm8, %v668_v14  ;;  %v736_v16 = vld [vmem:[#allocation2] sm:$0xff] }
 0x26f   : > { %v737_v15 = vld [vmem:[#allocation2 + $0x8] sm:$0xff]  ;;  %v740_v18 = vld [vmem:[#allocation2] sm:$0xfe] }
 0x270   : > { %1601 = vmatprep.mubr.msk.f32.mxu0 %vm273_vm0, %v737_v15  ;;  %v741_v17 = vld [vmem:[#allocation2 + $0x8] sm:$0xfe]  ;;  %v750_v27 = vrot.slane %v740_v18, 1  ;;  %v921_v2 = vld [vmem:[#allocation2] sm:$0xfc]  ;;  %v1123_v15 = vld [vmem:[#allocation8 + $0x248] sm:$0xff] }
 0x271   : > { %911 = vmatmul.mubr.f32.vlgmr.msra.gmra.mrb[4].mxu0 %v736_v16  ;;  %v753_v24 = vrot.slane %v741_v17, 1  ;;  %v922_v36 = vld [vmem:[#allocation2 + $0x8] sm:$0xfc]  ;;  %v929_v6 = vrot.slane %v921_v2, 2  ;;  %v1088_v14 = vld [vmem:[#allocation8 + $0x130] sm:$0xff] }
 0x272   : > { %v742_v29 = vld [vmem:[#allocation2 + $0x20] sm:$0x1]  ;;  %v932_v40 = vrot.slane %v922_v36, 2  ;;  %v1125_v16 = vld [vmem:[#allocation8 + $0x258] sm:$0xff]  ;;  %v1783_v17 = vpack.c.bf16 %v1088_v14, %v1086_v12  ;;  %v1789_v36 = vpack.c.bf16 %v1097_v34, %v1095_v33 }
 0x273   : > { %v743_v21 = vld [vmem:[#allocation2 + $0x28] sm:$0x1]  ;;  %v756_v35 = vrot.slane %v742_v29, 1  ;;  %v923_v5 = vld [vmem:[#allocation2 + $0x20] sm:$0x3]  ;;  %v2509_v18 = vpack.c.bf16 %v1125_v16, %v1123_v15  ;;  %v1107_v16 = vld [vmem:[#allocation8 + $0x1c8] sm:$0xff] }
 0x274   : > { %v2480_v23 = vld [vmem:[#allocation2 + $0x10] sm:$0xff]  ;;  %v758_v28 = vrot.slane %v743_v21, 1  ;;  %v924_v1 = vld [vmem:[#allocation2 + $0x28] sm:$0x3]  ;;  %v935_v8 = vrot.slane %v923_v5, 2  ;;  %v1091_v21 = vld [vmem:[#allocation8 + $0x148] sm:$0xff] }
 0x275   : > { %v2478_v22 = vld [vmem:[#allocation2 + $0x18] sm:$0xff]  ;;  %v751_v26 = vrot.slane %v2480_v23, 1  ;;  %v930_v3 = vrot.slane %v2480_v23, 2  ;;  %v937_v4 = vrot.slane %v924_v1, 2  ;;  %v1129_v29 = vld [vmem:[#allocation8 + $0x278] sm:$0xff]  ;;  %v1104_v1 = vld [vmem:[#allocation8 + $0x1b0] sm:$0xff] }
 0x276   : > { %v754_v25 = vrot.slane %v2478_v22, 1  ;;  %1602 = vmatprep.mubr.msk.f32.mxu0 %vm273_vm0, %v2478_v22  ;;  %v933_v37 = vrot.slane %v2478_v22, 2  ;;  %v2511_v22 = vpack.c.bf16 %v1124_v20, %v1122_v19  ;;  %v1106_v20 = vld [vmem:[#allocation8 + $0x1c0] sm:$0xff]  ;;  %v1113_v33 = vld [vmem:[#allocation8 + $0x1f8] sm:$0xff] }
 0x277   : > { %916 = vmatmul.mubr.f32.gmra.mrb[6].mxu0 %v2480_v23  ;;  %v752_v32 = vsel %vm378_vm9, %v750_v27, %v751_v26  ;;  %v757_v43 = vsel %vm378_vm9, %v751_v26, %v756_v35  ;;  %v931_v7 = vsel %vm558_vm10, %v929_v6, %v930_v3  ;;  %v936_v10 = vsel %vm558_vm10, %v930_v3, %v935_v8  ;;  %v1093_v23 = vld [vmem:[#allocation8 + $0x158] sm:$0xff]  ;;  %v1138_v3 = vld [vmem:[#allocation8 + $0x2c0] sm:$0xff] }
 0x278   : > { %v755_v31 = vsel %vm378_vm9, %v753_v24, %v754_v25  ;;  %v759_v38 = vsel %vm378_vm9, %v754_v25, %v758_v28  ;;  %v934_v44 = vsel %vm558_vm10, %v932_v40, %v933_v37  ;;  %v938_v9 = vsel %vm558_vm10, %v933_v37, %v937_v4  ;;  %v1090_v24 = vld [vmem:[#allocation8 + $0x140] sm:$0xff]  ;;  %v1092_v25 = vld [vmem:[#allocation8 + $0x150] sm:$0xff]  ;;  %v1127_v28 = vld [vmem:[#allocation8 + $0x268] sm:$0xff] }
 0x279   : > { %1599 = vmatprep.mubr.msk.f32.mxu1 %vm273_vm0, %v755_v31  ;;  %v1785_v26 = vpack.c.bf16 %v1093_v23, %v1091_v21  ;;  %v1787_v27 = vpack.c.bf16 %v1092_v25, %v1090_v24  ;;  %v2515_v31 = vpack.c.bf16 %v1129_v29, %v1127_v28  ;;  %v1094_v37 = vld [vmem:[#allocation8 + $0x160] sm:$0xff]  ;;  %v1133_v40 = vld [vmem:[#allocation8 + $0x298] sm:$0xff]  ;;  %v1140_v4 = vld [vmem:[#allocation8 + $0x2d0] sm:$0xff] }
 0x27a   : > { %831 = vmatmul.mubr.f32.vlgmr.msra.gmra.mrb[8].mxu1 %v752_v32  ;;  %v1128_v32 = vld [vmem:[#allocation8 + $0x270] sm:$0xff]  ;;  %v2535_v6 = vpack.c.bf16 %v1140_v4, %v1138_v3  ;;  %v1143_v23 = vld [vmem:[#allocation8 + $0x2e8] sm:$0xff]  ;;  %v1145_v25 = vld [vmem:[#allocation8 + $0x2f8] sm:$0xff] }
 0x27b   : > { %1756 = vmatpush1.bf16.msra.mxu1 %v1755_v30  ;;  %1600 = vmatprep.mubr.msk.f32.mxu1 %vm273_vm0, %v759_v38  ;;  %v1126_v30 = vld [vmem:[#allocation8 + $0x260] sm:$0xff]  ;;  %v1096_v38 = vld [vmem:[#allocation8 + $0x170] sm:$0xff]  ;;  %v2539_v28 = vpack.c.bf16 %v1145_v25, %v1143_v23  ;;  %v1053_v25 = vld [vmem:[#allocation8 + $0x18] sm:$0xff] }
 0x27c   : > { %1757 = vmatprep.subr.bf16.mxu1 %v2156_v0  ;;  %v2517_v35 = vpack.c.bf16 %v1128_v32, %v1126_v30  ;;  %v1108_v21 = vld [vmem:[#allocation8 + $0x1d0] sm:$0xff]  ;;  %v1111_v32 = vld [vmem:[#allocation8 + $0x1e8] sm:$0xff] }
 0x27d   : > { %v1803_v24 = vpack.c.bf16 %v1108_v21, %v1106_v20  ;;  %v1605_v30 = vld [vmem:[%s2682_s2 + $0x1] ss:$0 sm:$0xff]  ;;  %v1805_v34 = vpack.c.bf16 %v1113_v33, %v1111_v32 }
 0x27e   : > { %836 = vmatmul.mubr.f32.gmra.mrb[10].mxu1 %v757_v43  ;;  %v1791_v43 = vpack.c.bf16 %v1096_v38, %v1094_v37  ;;  %v1112_v37 = vld [vmem:[#allocation8 + $0x1f0] sm:$0xff]  ;;  %v1147_v38 = vld [vmem:[#allocation8 + $0x308] sm:$0xff] }
 0x27f   : > { %1759 = vmatpush1.bf16.msra.mxu1 %v1758_v39  ;;  %1603 = vmatprep.mubr.msk.f32.mxu1 %vm273_vm0, %v934_v44  ;;  %v1131_v39 = vld [vmem:[#allocation8 + $0x288] sm:$0xff] }
 0x280   : > { %1760 = vmatprep.subr.bf16.mxu1 %v2156_v0  ;;  %v2520_v44 = vpack.c.bf16 %v1133_v40, %v1131_v39 }
 0x283   : > { %1762 = vmatpush1.bf16.msra.mxu1 %v1761_v45  ;;  %v1099_v45 = vld [vmem:[#allocation8 + $0x188] sm:$0xff] }
 0x284   : > { %1763 = vmatprep.subr.bf16.mxu1 %v2156_v0  ;;  %v1793_v49 = vpack.c.bf16 %v1101_v46, %v1099_v45 }
 0x287   : > { %1765 = vmatpush1.bf16.msra.mxu1 %v1764_v48  ;;  %v2523_v48 = vpack.c.bf16 %v1132_v42, %v1130_v41  ;;  %v1149_v41 = vld [vmem:[#allocation8 + $0x318] sm:$0xff]  ;;  %v1146_v42 = vld [vmem:[#allocation8 + $0x300] sm:$0xff] }
 0x288   : > { %1766 = vmatprep.subr.bf16.mxu1 %v2156_v0  ;;  %v2548_v47 = vpack.c.bf16 %v1149_v41, %v1147_v38  ;;  %v1050_v38 = vld [vmem:[#allocation8] sm:$0xff]  ;;  %v1055_v41 = vld [vmem:[#allocation8 + $0x28] sm:$0xff] }
 0x28b   : > { %1768 = vmatpush1.bf16.msra.mxu1 %v1767_v51  ;;  %v1135_v51 = vld [vmem:[#allocation8 + $0x2a8] sm:$0xff] }
 0x28c   : > { %1769 = vmatprep.subr.bf16.mxu1 %v2156_v0  ;;  %v2526_v53 = vpack.c.bf16 %v1137_v52, %v1135_v51  ;;  %v1117_v51 = vld [vmem:[#allocation8 + $0x218] sm:$0xff]  ;;  %v1114_v52 = vld [vmem:[#allocation8 + $0x200] sm:$0xff] }
 0x28f   : > { %1771 = vmatpush1.bf16.msra.mxu1 %v1770_v54  ;;  %v1134_v54 = vld [vmem:[#allocation8 + $0x2a0] sm:$0xff] }
 0x290   : > { %1772 = vmatprep.subr.bf16.mxu1 %v2156_v0  ;;  %v2529_v61 = vpack.c.bf16 %v1136_v55, %v1134_v54  ;;  %v1809_v54 = vpack.c.bf16 %v1117_v51, %v1115_v50  ;;  %v1116_v55 = vld [vmem:[#allocation8 + $0x210] sm:$0xff] }
 0x293   : > { %1774 = vmatpush1.bf16.msra.mxu1 %v1773_v57  ;;  %v1105_v57 = vld [vmem:[#allocation8 + $0x1b8] sm:$0xff] }
 0x294   : > { %1775 = vmatprep.subr.bf16.mxu1 %v2156_v0  ;;  %v1797_v62 = vpack.c.bf16 %v1105_v57, %v1103_v56  ;;  %v1151_v56 = vld [vmem:[#allocation8 + $0x328] sm:$0xff]  ;;  %v1153_v57 = vld [vmem:[#allocation8 + $0x338] sm:$0xff] }
 0x297   : > { %1777 = vmatpush1.bf16.msra.mxu1 %v1776_v60  ;;  %v1141_v60 = vld [vmem:[#allocation8 + $0x2d8] sm:$0xff] }
 0x298   : > { %1778 = vmatprep.subr.bf16.mxu1 %v2156_v0  ;;  %v1089_v0 = vld [vmem:[#allocation8 + $0x138] sm:$0xff]  ;;  %v2532_v2 = vpack.c.bf16 %v1141_v60, %v1139_v59  ;;  %v1811_v59 = vpack.c.bf16 %v1116_v55, %v1114_v52  ;;  %v2553_v60 = vpack.c.bf16 %v1153_v57, %v1151_v56 }
 0x299   : > { %v1781_v13 = vpack.c.bf16 %v1089_v0, %v1087_v11 }
 0x29b   : > { %1780 = vmatpush1.bf16.msra.mxu1 %v1779_v63  ;;  %1782 = vmatprep.subr.bf16.mxu0 %v1781_v13  ;;  %v1102_v63 = vld [vmem:[#allocation8 + $0x1a0] sm:$0xff] }
 0x29c   : > { %1784 = vmatpush1.bf16.msra.mxu0 %v1783_v17  ;;  %1889 = vmatprep.subr.bf16.mxu1 %v2509_v18  ;;  %v1799_v5 = vpack.c.bf16 %v1104_v1, %v1102_v63  ;;  %v1109_v17 = vld [vmem:[#allocation8 + $0x1d8] sm:$0xff]  ;;  %v1152_v63 = vld [vmem:[#allocation8 + $0x330] sm:$0xff]  ;;  %v1119_v1 = vld [vmem:[#allocation8 + $0x228] sm:$0xff] }
 0x29d   : > { %1786 = vmatprep.subr.bf16.mxu0 %v1785_v26  ;;  %v1801_v19 = vpack.c.bf16 %v1109_v17, %v1107_v16  ;;  %v1142_v26 = vld [vmem:[#allocation8 + $0x2e0] sm:$0xff] }
 0x29e   : > { %1010 = vmatmul.mubr.f32.vlgmr.msra.gmra.mrb[12].mxu1 %v931_v7 }
 0x29f   : > { %1604 = vmatprep.mubr.msk.f32.mxu1 %vm273_vm0, %v938_v9  ;;  %1898 = vmatpush1.bf16.msra.mxu1 %v2511_v22 }
 0x2a0   : > { %1890 = vmatprep.subr.bf16.mxu1 %v2515_v31  ;;  %1788 = vmatpush1.bf16.msra.mxu0 %v1787_v27  ;;  %v1144_v27 = vld [vmem:[#allocation8 + $0x2f0] sm:$0xff] }
 0x2a1   : > { %1790 = vmatprep.subr.bf16.mxu0 %v1789_v36  ;;  %v2541_v29 = vpack.c.bf16 %v1144_v27, %v1142_v26  ;;  %v1110_v36 = vld [vmem:[#allocation8 + $0x1e0] sm:$0xff] }
 0x2a2   : > { %1015 = vmatmul.mubr.f32.gmra.mrb[14].mxu1 %v936_v10  ;;  %v1807_v40 = vpack.c.bf16 %v1112_v37, %v1110_v36 }
 0x2a3   : > { %1899 = vmatpush1.bf16.msra.mxu1 %v2517_v35 }
 0x2a4   : > { %1891 = vmatprep.subr.bf16.mxu1 %v2520_v44  ;;  %1792 = vmatpush1.bf16.msra.mxu0 %v1791_v43  ;;  %v1148_v43 = vld [vmem:[#allocation8 + $0x310] sm:$0xff] }
 0x2a5   : > { %1794 = vmatprep.subr.bf16.mxu0 %v1793_v49  ;;  %v2550_v49 = vpack.c.bf16 %v1148_v43, %v1146_v42  ;;  %v1057_v42 = vld [vmem:[#allocation8 + $0x38] sm:$0xff] }
 0x2a7   : > { %1900 = vmatpush1.bf16.msra.mxu1 %v2523_v48 }
 0x2a8   : > { %1892 = vmatprep.subr.bf16.mxu1 %v2526_v53  ;;  %1796 = vmatpush1.bf16.msra.mxu0 %v1795_v58 }
 0x2a9   : > { %1798 = vmatprep.subr.bf16.mxu0 %v1797_v62  ;;  %v1150_v62 = vld [vmem:[#allocation8 + $0x320] sm:$0xff] }
 0x2aa   : > { %v2556_v4 = vpack.c.bf16 %v1152_v63, %v1150_v62 }
 0x2ab   : > { %1901 = vmatpush1.bf16.msra.mxu1 %v2529_v61 }
 0x2ac   : > { %1893 = vmatprep.subr.bf16.mxu1 %v2532_v2  ;;  %1800 = vmatpush1.bf16.msra.mxu0 %v1799_v5  ;;  %v1121_v5 = vld [vmem:[#allocation8 + $0x238] sm:$0xff] }
 0x2ad   : > { %1802 = vmatprep.subr.bf16.mxu0 %v1801_v19  ;;  %v1156_v19 = vld [vmem:[#allocation8 + $0x350] sm:$0xff] }
 0x2af   : > { %1902 = vmatpush1.bf16.msra.mxu1 %v2535_v6 }
 0x2b0   : > { %1804 = vmatpush1.bf16.msra.mxu0 %v1803_v24  ;;  %1894 = vmatprep.subr.bf16.mxu1 %v2539_v28  ;;  %v1051_v24 = vld [vmem:[#allocation8 + $0x8] sm:$0xff] }
 0x2b1   : > { %1806 = vmatprep.subr.bf16.mxu0 %v1805_v34  ;;  %v1817_v27 = vpack.c.bf16 %v1053_v25, %v1051_v24  ;;  %v1063_v24 = vld [vmem:[#allocation8 + $0x68] sm:$0xff]  ;;  %v1065_v25 = vld [vmem:[#allocation8 + $0x78] sm:$0xff] }
 0x2b3   : > { %1903 = vmatpush1.bf16.msra.mxu1 %v2541_v29 }
 0x2b4   : > { %1808 = vmatpush1.bf16.msra.mxu0 %v1807_v40  ;;  %1895 = vmatprep.subr.bf16.mxu1 %v2548_v47  ;;  %v1052_v40 = vld [vmem:[#allocation8 + $0x10] sm:$0xff] }
 0x2b5   : > { %1810 = vmatprep.subr.bf16.mxu0 %v1809_v54 }
 0x2b7   : > { %1904 = vmatpush1.bf16.msra.mxu1 %v2550_v49 }
 0x2b8   : > { %1896 = vmatprep.subr.bf16.mxu1 %v2553_v60  ;;  %1812 = vmatpush1.bf16.msra.mxu0 %v1811_v59 }
 0x2bb   : > { %1905 = vmatpush1.bf16.msra.mxu1 %v2556_v4 }
 0x344   : > { %v912_v7 = vpop.f32.mrb[4].mxu0 }
 0x345   : > { %v914_v8 = vpop.f32.mrb[5].mxu0 }
 0x346   : > { %v1120_v8 = vld [vmem:[#allocation8 + $0x230] sm:$0xff] }
 0x34a   : > { %v917_v9 = vpop.f32.mrb[6].mxu0 }
 0x34b   : > { %v919_v10 = vpop.f32.mrb[7].mxu0 }
 0x34d   : > { %v832_v11 = vpop.f32.mrb[8].mxu1 }
 0x34e   : > { %v913_v0 = vadd.f32 %v912_v7, %v832_v11  ;;  %v834_v12 = vpop.f32.mrb[9].mxu1  ;;  %v1118_v7 = vld [vmem:[#allocation8 + $0x220] sm:$0xff] }
 0x34f   : > { %v1155_v12 = vld [vmem:[#allocation8 + $0x348] sm:$0xff]  ;;  %v1815_v16 = vpack.c.bf16 %v1120_v8, %v1118_v7 }
 0x351   : > { %v837_v13 = vpop.f32.mrb[10].mxu1 }
 0x352   : > { %v918_v14 = vadd.f32 %v917_v9, %v837_v13  ;;  %v839_v15 = vpop.f32.mrb[11].mxu1  ;;  %v1157_v13 = vld [vmem:[#allocation8 + $0x358] sm:$0xff] }
 0x353   : > { %v1154_v15 = vld [vmem:[#allocation8 + $0x340] sm:$0xff]  ;;  %v2559_v17 = vpack.c.bf16 %v1157_v13, %v1155_v12  ;;  %v1059_v12 = vld [vmem:[#allocation8 + $0x48] sm:$0xff]  ;;  %v1061_v13 = vld [vmem:[#allocation8 + $0x58] sm:$0xff] }
 0x354   : > { %v2562_v23 = vpack.c.bf16 %v1156_v19, %v1154_v15  ;;  %v1825_v19 = vpack.c.bf16 %v1061_v13, %v1059_v12  ;;  %v1082_v13 = vld [vmem:[#allocation8 + $0x100] sm:$0xff] }
 0x355   : > { %1897 = vmatprep.subr.bf16.mxu1 %v2559_v17 }
 0x356   : > { %1906 = vmatpush1.bf16.msra.mxu1 %v2562_v23 }
 0x371   : > { %v1011_v39 = vpop.f32.mrb[12].mxu1 }
 0x372   : > { %v1020_v45 = vadd.f32 %v1011_v39, %v913_v0  ;;  %v1013_v46 = vpop.f32.mrb[13].mxu1  ;;  %v1813_v0 = vpack.c.bf16 %v1121_v5, %v1119_v1  ;;  %v1819_v1 = vpack.c.bf16 %v1052_v40, %v1050_v38  ;;  %v1068_v40 = vld [vmem:[#allocation8 + $0x90] sm:$0xff] }
 0x374   : > { %v1026_v58 = vadd.f32 %v1605_v30, %v1020_v45  ;;  %1814 = vmatprep.subr.bf16.mxu0 %v1813_v0 }
 0x375   : > { %v1016_v3 = vpop.f32.mrb[14].mxu1  ;;  %1816 = vmatpush1.bf16.msra.mxu0 %v1815_v16 }
 0x376   : > { %v1028_v9 = vmax.f32 %v1026_v58, 0.0  ;;  %v1021_v10 = vadd.f32 %v1016_v3, %v918_v14  ;;  %v1018_v11 = vpop.f32.mrb[15].mxu1  ;;  %1818 = vmatprep.subr.bf16.mxu0 %v1817_v27  ;;  %v1821_v3 = vpack.c.bf16 %v1057_v42, %v1055_v41  ;;  %v1071_v41 = vld [vmem:[#allocation8 + $0xa8] sm:$0xff]  ;;  %v1073_v42 = vld [vmem:[#allocation8 + $0xb8] sm:$0xff] }
 0x377   : > { %v1056_v11 = vld [vmem:[#allocation8 + $0x30] sm:$0xff] }
 0x378   : > { %v1032_v20 = vrot.slane %v1028_v9, 7  ;;  %v1027_v21 = vadd.f32 %v1605_v30, %v1021_v10  ;;  %v1054_v10 = vld [vmem:[#allocation8 + $0x20] sm:$0xff] }
 0x379   : > { %v1823_v16 = vpack.c.bf16 %v1056_v11, %v1054_v10  ;;  %v1083_v10 = vld [vmem:[#allocation8 + $0x108] sm:$0xff]  ;;  %v1085_v11 = vld [vmem:[#allocation8 + $0x118] sm:$0xff] }
 0x37a   : > { %v1029_v14 = vmax.f32 %v1027_v21, 0.0  ;;  %1035 = vrot.lane.b32.xlu0 %v1032_v20, %s2158_s24  ;;  %v1060_v21 = vld [vmem:[#allocation8 + $0x50] sm:$0xff]  ;;  %v1849_v12 = vpack.c.bf16 %v1085_v11, %v1083_v10 }
 0x37c   : > { %v1033_v26 = vrot.slane %v1029_v14, 7 }
 0x37e   : > { %1039 = vrot.lane.b32.xlu0 %v1033_v26, %s2158_s24  ;;  %v1034_v30 = vsel %vm284_vm2, %v1032_v20, %v1033_v26  ;;  %v1058_v20 = vld [vmem:[#allocation8 + $0x40] sm:$0xff] }
 0x37f   : > { %1037 = vrot.lane.b32.xlu1 %v1034_v30, %s2158_s24  ;;  %v1827_v27 = vpack.c.bf16 %v1060_v21, %v1058_v20  ;;  %v1829_v30 = vpack.c.bf16 %v1065_v25, %v1063_v24  ;;  %s2077_s24 = scalar_lea.vmem %s2631_s12, 512 }
 0x380   : > { %p2078_p8 = scmp.ne.s32.totalorder %s2631_s12, %s2077_s24  ;;  %p2085_p9 = scmp.lt.s32.totalorder %s2083_s15, %s2077_s24 }
 0x382   : > { %p2079_p2 = pnand %p2078_p8, %p2699_p0  ;;  %p2086_p12 = por %p2085_p9, %p2084_p5 }
 0x384   : > { %p2080_p3 = pneg %p2079_p2 }
 0x386   : > { %p2087_p1 = pnand %p2086_p12, %p2080_p3 }
 0x3ec   : > { %v1036_v32 = vpop.permute.xlu0 %1035 }
 0x3ed   : > { %1044 = vst.msk [vmem:[#allocation2] sm:$0xfe] %vm297_vm3, %v1036_v32 }
 0x3ee   : > { %1045 = vst.msk [vmem:[#allocation2 + $0x8] sm:$0xfe] %vm299_vm4, %v1036_v32  ;;  %v1062_v32 = vld [vmem:[#allocation8 + $0x60] sm:$0xff] }
 0x3f0   : > { %v1040_v33 = vpop.permute.xlu0 %1039 }
 0x3f1   : > { %1048 = vst.msk [vmem:[#allocation2 + $0x20] sm:$0x1] %vm305_vm5, %v1040_v33  ;;  %v1038_v34 = vpop.permute.xlu1 %1037 }
 0x3f2   : > { %1049 = vst.msk [vmem:[#allocation2 + $0x28] sm:$0x1] %vm307_vm6, %v1040_v33  ;;  %v1064_v33 = vld [vmem:[#allocation8 + $0x70] sm:$0xff] }
 0x3f3   : > { %1046 = vst.msk [vmem:[#allocation2 + $0x10] sm:$0xff] %vm301_vm7, %v1038_v34 }
 0x3f4   : > { %1047 = vst.msk [vmem:[#allocation2 + $0x18] sm:$0xff] %vm303_vm8, %v1038_v34  ;;  %v1163_v37 = vld [vmem:[#allocation2] sm:$0xfe]  ;;  %v1067_v34 = vld [vmem:[#allocation8 + $0x88] sm:$0xff] }
 0x3f5   : > { %v1164_v36 = vld [vmem:[#allocation2 + $0x8] sm:$0xfe]  ;;  %v1173_v54 = vrot.slane %v1163_v37, 1  ;;  %v1831_v37 = vpack.c.bf16 %v1064_v33, %v1062_v32 }
 0x3f6   : > { %v1176_v39 = vrot.slane %v1164_v36, 1  ;;  %v1160_v26 = vld [vmem:[#allocation2 + $0x8] sm:$0xff] }
 0x3f7   : > { %v1069_v36 = vld [vmem:[#allocation8 + $0x98] sm:$0xff] }
 0x3f8   : > { %v1350_v45 = vld [vmem:[#allocation2 + $0x20] sm:$0x3]  ;;  %v1833_v38 = vpack.c.bf16 %v1069_v36, %v1067_v34  ;;  %v1349_v20 = vld [vmem:[#allocation2 + $0x8] sm:$0xfc] }
 0x3f9   : > { %v1351_v43 = vld [vmem:[#allocation2 + $0x28] sm:$0x3]  ;;  %v1362_v55 = vrot.slane %v1350_v45, 2  ;;  %v1165_v63 = vld [vmem:[#allocation2 + $0x20] sm:$0x1]  ;;  %v1837_v45 = vpack.c.bf16 %v1073_v42, %v1071_v41  ;;  %v1359_v21 = vrot.slane %v1349_v20, 2 }
 0x3fa   : > { %v1166_v46 = vld [vmem:[#allocation2 + $0x28] sm:$0x1]  ;;  %v1364_v51 = vrot.slane %v1351_v43, 2  ;;  %v2578_v52 = vld [vmem:[#allocation2 + $0x10] sm:$0xff]  ;;  %v1179_v0 = vrot.slane %v1165_v63, 1  ;;  %v1076_v63 = vld [vmem:[#allocation8 + $0xd0] sm:$0xff] }
 0x3fb   : > { %v2576_v50 = vld [vmem:[#allocation2 + $0x18] sm:$0xff]  ;;  %v1181_v56 = vrot.slane %v1166_v46, 1  ;;  %v1174_v59 = vrot.slane %v2578_v52, 1  ;;  %v1357_v62 = vrot.slane %v2578_v52, 2  ;;  %v1070_v46 = vld [vmem:[#allocation8 + $0xa0] sm:$0xff] }
 0x3fc   : > { %v1177_v57 = vrot.slane %v2576_v50, 1  ;;  %v1360_v58 = vrot.slane %v2576_v50, 2 }
 0x3fd   : > { %v1175_v8 = vsel %vm378_vm9, %v1173_v54, %v1174_v59  ;;  %v1363_v9 = vsel %vm558_vm10, %v1357_v62, %v1362_v55  ;;  %v1180_v14 = vsel %vm378_vm9, %v1174_v59, %v1179_v0  ;;  %v1075_v54 = vld [vmem:[#allocation8 + $0xc8] sm:$0xff]  ;;  %v1077_v55 = vld [vmem:[#allocation8 + $0xd8] sm:$0xff]  ;;  %v1074_v59 = vld [vmem:[#allocation8 + $0xc0] sm:$0xff] }
 0x3fe   : > { %v1178_v5 = vsel %vm378_vm9, %v1176_v39, %v1177_v57  ;;  %v1365_v7 = vsel %vm558_vm10, %v1360_v58, %v1364_v51  ;;  %v1182_v15 = vsel %vm378_vm9, %v1177_v57, %v1181_v56  ;;  %v1066_v39 = vld [vmem:[#allocation8 + $0x80] sm:$0xff]  ;;  %v1072_v51 = vld [vmem:[#allocation8 + $0xb0] sm:$0xff]  ;;  %v1841_v57 = vpack.c.bf16 %v1077_v55, %v1075_v54 }
 0x3ff   : > { %1606 = vmatprep.mubr.msk.f32.mxu0 %vm273_vm0, %v1178_v5  ;;  %1611 = vmatprep.mubr.msk.f32.mxu1 %vm273_vm0, %v1365_v7  ;;  %v1835_v43 = vpack.c.bf16 %v1068_v40, %v1066_v39  ;;  %v1839_v56 = vpack.c.bf16 %v1072_v51, %v1070_v46  ;;  %v1843_v5 = vpack.c.bf16 %v1076_v63, %v1074_v59 }
 0x400   : > { %1254 = vmatmul.mubr.f32.vlgmr.msra.gmra.mrb[8].mxu0 %v1175_v8  ;;  %1443 = vmatmul.mubr.f32.vlgmr.msra.gmra.mrb[16].mxu1 %v1363_v9  ;;  %v1078_v8 = vld [vmem:[#allocation8 + $0xe0] sm:$0xff]  ;;  %v1080_v9 = vld [vmem:[#allocation8 + $0xf0] sm:$0xff] }
 0x401   : > { %1820 = vmatpush1.bf16.msra.mxu0 %v1819_v1  ;;  %1607 = vmatprep.mubr.msk.f32.mxu0 %vm273_vm0, %v1182_v15  ;;  %v1079_v1 = vld [vmem:[#allocation8 + $0xe8] sm:$0xff]  ;;  %v1847_v0 = vpack.c.bf16 %v1080_v9, %v1078_v8  ;;  %v1084_v15 = vld [vmem:[#allocation8 + $0x110] sm:$0xff] }
 0x402   : > { %1822 = vmatprep.subr.bf16.mxu0 %v1821_v3  ;;  %v1081_v3 = vld [vmem:[#allocation8 + $0xf8] sm:$0xff] }
 0x403   : > { %v1845_v7 = vpack.c.bf16 %v1081_v3, %v1079_v1 }
 0x404   : > { %1260 = vmatmul.mubr.f32.gmra.mrb[10].mxu0 %v1180_v14  ;;  %v1361_v14 = vsel %vm558_vm10, %v1359_v21, %v1360_v58 }
 0x405   : > { %1824 = vmatpush1.bf16.msra.mxu0 %v1823_v16  ;;  %1608 = vmatprep.mubr.msk.f32.mxu0 %vm273_vm0, %v1160_v26  ;;  %v1851_v16 = vpack.c.bf16 %v1084_v15, %v1082_v13 }
 0x406   : > { %1826 = vmatprep.subr.bf16.mxu0 %v1825_v19  ;;  %v1159_v19 = vld [vmem:[#allocation2] sm:$0xff] }
 0x409   : > { %1828 = vmatpush1.bf16.msra.mxu0 %v1827_v27 }
 0x40a   : > { %1830 = vmatprep.subr.bf16.mxu0 %v1829_v30 }
 0x40d   : > { %1832 = vmatpush1.bf16.msra.mxu0 %v1831_v37 }
 0x40e   : > { %1834 = vmatprep.subr.bf16.mxu0 %v1833_v38 }
 0x411   : > { %1836 = vmatpush1.bf16.msra.mxu0 %v1835_v43 }
 0x412   : > { %1838 = vmatprep.subr.bf16.mxu0 %v1837_v45 }
 0x415   : > { %1840 = vmatpush1.bf16.msra.mxu0 %v1839_v56 }
 0x416   : > { %1842 = vmatprep.subr.bf16.mxu0 %v1841_v57 }
 0x419   : > { %1844 = vmatpush1.bf16.msra.mxu0 %v1843_v5 }
 0x41a   : > { %1846 = vmatprep.subr.bf16.mxu0 %v1845_v7 }
 0x41d   : > { %1848 = vmatpush1.bf16.msra.mxu0 %v1847_v0 }
 0x41e   : > { %1850 = vmatprep.subr.bf16.mxu0 %v1849_v12 }
 0x421   : > { %1852 = vmatpush1.bf16.msra.mxu0 %v1851_v16 }
 0x422   : > { %1854 = vmatprep.subr.bf16.mxu0 %v2509_v18  ;;  %v1348_v18 = vld [vmem:[#allocation2] sm:$0xfc] }
 0x424   : > { %1336 = vmatmul.mubr.f32.vlgmr.msra.gmra.mrb[8].mxu0 %v1159_v19 }
 0x425   : > { %1609 = vmatprep.mubr.msk.f32.mxu0 %vm273_vm0, %v2576_v50  ;;  %1856 = vmatpush1.bf16.msra.mxu0 %v2511_v22  ;;  %v1356_v22 = vrot.slane %v1348_v18, 2 }
 0x426   : > { %1858 = vmatprep.subr.bf16.mxu0 %v2515_v31 }
 0x427   : > { %v1358_v31 = vsel %vm558_vm10, %v1356_v22, %v1357_v62 }
 0x428   : > { %1342 = vmatmul.mubr.f32.gmra.mrb[10].mxu0 %v2578_v52 }
 0x429   : > { %1860 = vmatpush1.bf16.msra.mxu0 %v2517_v35  ;;  %1610 = vmatprep.mubr.msk.f32.mxu0 %vm273_vm0, %v1361_v14 }
 0x42a   : > { %1862 = vmatprep.subr.bf16.mxu0 %v2520_v44 }
 0x42d   : > { %1864 = vmatpush1.bf16.msra.mxu0 %v2523_v48  ;;  %v1454_v48 = vlaneseq }
 0x42e   : > { %1866 = vmatprep.subr.bf16.mxu0 %v2526_v53 }
 0x42f   : > { %v1455_v53 = vshrl.u32 %v1454_v48, 7 }
 0x431   : > { %1868 = vmatpush1.bf16.msra.mxu0 %v2529_v61  ;;  %v1456_v61 = vsub.s32 0, %v1455_v53 }
 0x432   : > { %1870 = vmatprep.subr.bf16.mxu0 %v2532_v2  ;;  %v1158_v2 = vld [vmem:[%s2684_s4] sm:$0x3] }
 0x435   : > { %1872 = vmatpush1.bf16.msra.mxu0 %v2535_v6  ;;  %v1460_v6 = vsub.s32 1, %v1455_v53 }
 0x436   : > { %1874 = vmatprep.subr.bf16.mxu0 %v2539_v28  ;;  %v1457_v28 = vrot.slane %v1158_v2, %v1456_v61 }
 0x439   : > { %1876 = vmatpush1.bf16.msra.mxu0 %v2541_v29 }
 0x43a   : > { %1878 = vmatprep.subr.bf16.mxu0 %v2548_v47  ;;  %v1461_v47 = vrot.slane %v1158_v2, %v1460_v6 }
 0x43d   : > { %1880 = vmatpush1.bf16.msra.mxu0 %v2550_v49 }
 0x43e   : > { %1882 = vmatprep.subr.bf16.mxu0 %v2553_v60 }
 0x441   : > { %1884 = vmatpush1.bf16.msra.mxu0 %v2556_v4 }
 0x442   : > { %1886 = vmatprep.subr.bf16.mxu0 %v2559_v17 }
 0x445   : > { %1888 = vmatpush1.bf16.msra.mxu0 %v2562_v23 }
 0x448   : > { %1437 = vmatmul.mubr.f32.vlgmr.msra.gmra.mrb[8].mxu0 %v1358_v31 }
 0x4d3   : > { %v1444_v35 = vpop.f32.mrb[16].mxu1 }
 0x4d4   : > { %v1446_v44 = vpop.f32.mrb[17].mxu1 }
 0x4fb   : > { %v1343_v29 = vpop.f32.mrb[10].mxu0 }
 0x4fc   : > { %v1907_v49 = vadd.f32 %v1444_v35, %v1343_v29  ;;  %v1345_v60 = vpop.f32.mrb[11].mxu0 }
 0x4fd   : > { %v1908_v4 = vadd.f32 %v1446_v44, %v1345_v60 }
 0x4fe   : > { %v1466_v17 = vadd.f32 %v1907_v49, %v1457_v28 }
 0x4ff   : > { %v1467_v23 = vadd.f32 %v1908_v4, %v1461_v47 }
 0x500   : > { %1471 = vst [vmem:[%s271_s29 + $0x10] sm:$0xff] %v1466_v17 }
 0x501   : > { %1472 = vst.msk [vmem:[%s271_s29 + $0x18] sm:$0xff] %vm1469_vm11, %v1467_v23 }
 0x51b   : > { %v1438_v50 = vpop.f32.mrb[8].mxu0 }
 0x51c   : > { %v1464_v52 = vadd.f32 %v1457_v28, %v1438_v50  ;;  %v1440_v58 = vpop.f32.mrb[9].mxu0 }
 0x51d   : > { %v1465_v62 = vadd.f32 %v1461_v47, %v1440_v58 }
 0x51e   : > { %1468 = vst [vmem:[%s271_s29] sm:$0xff] %v1464_v52 }
 0x51f   : > { %1470 = vst.msk [vmem:[%s271_s29 + $0x8] sm:$0xff] %vm1469_vm11, %v1465_v62 }
 0x520   : > { %2090 = shalt.err (!%p2087_p1)
}
 0x521   : > { %s2091_s16 = scalar_lea.hbm %s2636_s10, 512  ;;  %s2095_s14 = scalar_lea.hbm %s2685_s5, 1024 }
 0x522   : > { %p2092_p13 = scmp.ne.s32.totalorder %s2636_s10, %s2091_s16  ;;  %p2096_p4 = scmp.lt.u32.totalorder %s2636_s10, %s2685_s5 }
 0x523   : > { %p2097_p7 = scmp.lt.u32.totalorder %s2095_s14, %s2091_s16  ;;  %p2099_p8 = scmp.lt.u32.totalorder %s2091_s16, %s2636_s10 }
 0x524   : > { %p2093_p6 = pnand %p2092_p13, %p2699_p0 }
 0x525   : > { %p2098_p11 = por %p2097_p7, %p2096_p4 }
 0x526   : > { %p2094_p10 = pneg %p2093_p6 }
 0x527   : > { %p2100_p2 = por %p2099_p8, %p2098_p11 }
 0x529   : > { %p2101_p3 = pnand %p2100_p2, %p2094_p10 }
 0x52b   : > { %2104 = shalt.err (!%p2101_p3)
}
 0x52c   : > { %s2160_s30 = smov 256   ;;  %s2161_s9 = smov 16  }
 0x52d   : > { %1925 = dma.vmem_to_hbm [thread:$0]  (%p2699_p0), %s2631_s12, 512, %s2636_s10, %s1474_s11, %s2160_s30, %s2160_s30, %s2161_s9  }
 0x52e PF: > { %s1502_s6 = sand.u32 1, %s2135_s18   ;;  %p2700_p5 = scmp.ne.s32.totalorder %s2690_s25, 0 }
 0x52f   : > { %p2701_p9 = scmp.ge.s32.totalorder %s2147_s21, 2  ;;  %s1503_s24 = scalar_lea.sflag [#allocation5], %s1502_s6 }
 0x531   : > { %p1939_p12 = pnand %p2701_p9, %p2700_p5 }
 0x533   : > { %2130 = dma.done.wait (!%p1939_p12), %s1503_s24, 512  }
 0x534   : > { %2132 = vsyncadd (!%p1939_p12), %s1503_s24, 4294966784  ;;  %p19_p1 = scmp.ge.s32.totalorder %s2305_s23, 4   ;;  %s2702_s18 = smov %s2139_s19 }
 0x535   : > { %s2703_s19 = smov %s2143_s20  ;;  %s2704_s20 = smov %s2314_s7 }
 0x536   : > { %s2705_s21 = smov %s2305_s23  ;;  %21 = sbr.rel (!%p19_p1) target bundleno = 6 (0x6), region = 94 }
 0x53d   :  { %1508 = vsyncpa [#allocation4], 1 }
 0x53e   :  { %1510 = vsyncpa [#allocation4 + $0x1], 1 }
 0x53f   :  { %1511 = vsyncpa [#allocation7], 1 }
 0x540   :  { %1512 = vsyncpa [#allocation5], 1 }
 0x541   :  { %1514 = vsyncpa [#allocation5 + $0x1], 1 }

</bundles_post_ra>
